<compile_context>
chip_gen: v6e
topology: v6e:2x2x1
jax: 0.10.0
libtpu: 0.0.40
codegen_flags: <defaults>
</compile_context>

<pallas_src>
import math

import jax
import jax.numpy as jnp
import numpy as np
from jax.experimental import pallas as pl
from jax.experimental.pallas import tpu as pltpu


# ---------------------------------------------------------------------------
# 1-D bilinear (align_corners=True) taps and interpolation matrix.
# The kernel's H-lerp and the reference / W-matrix share the same taps, so the
# two code paths are consistent by construction.
# ---------------------------------------------------------------------------
def _bilinear_taps(n_in: int, n_out: int):
    """Per-output-index (low_index, frac) taps; frac in [0, 1]."""
    if n_in == 1:
        return [0] * n_out, [0.0] * n_out
    lo, fr = [], []
    for i in range(n_out):
        src = i * (n_in - 1) / (n_out - 1)
        l = min(int(math.floor(src)), n_in - 2)
        lo.append(l)
        fr.append(src - l)
    return lo, fr


def _bilinear_matrix(n_in: int, n_out: int) -> jnp.ndarray:
    lo, fr = _bilinear_taps(n_in, n_out)
    a = np.zeros((n_out, n_in), dtype=np.float32)
    for i, (l, f) in enumerate(zip(lo, fr)):
        a[i, l] += 1.0 - f
        if n_in > 1:
            a[i, l + 1] += f
    return jnp.asarray(a)


def _pick_tile_px(total_px: int, quantum: int, target_px: int) -> int:
    """Pixel-tile size: a multiple of `quantum` that divides `total_px`,
    preferring lane-dense (multiple of 128) tiles no larger than target_px."""
    assert total_px % quantum == 0
    n = total_px // quantum
    cands = [k * quantum for k in range(1, n + 1) if n % k == 0]
    lane_ok = [c for c in cands if c % 128 == 0]
    pool = lane_ok if lane_ok else cands
    small = [c for c in pool if c <= target_px]
    return max(small) if small else min(pool)


# ---------------------------------------------------------------------------
# Fused kernel (upsample=True path).
#   grid = (N, num_pixel_tiles); tile axis iterates the flat high-res pixels.
#   x1_ref : (1, C1, H*W)      low-res input, flat pixels (io_dtype)
#   x2_ref : (1, C2, TP)       one high-res pixel tile (io_dtype)
#   w1_ref : (Cout, C1)        BN-folded weight, x1 half (io_dtype)
#   w2_ref : (Cout, C2)        BN-folded weight, x2 half (io_dtype)
#   awt_ref: (W, 2W)           W-interpolation matrix, pre-transposed (f32)
#   b_ref  : (Cout, 1)         folded BN bias (f32)
#   o_ref  : (1, Cout, TP)     one output pixel tile (io_dtype)
#   lo_scr : (Cout, H*W)       f32 scratch, low-res conv result
#   up_scr : (T, Cout, TP)     f32 scratch, upsampled x1 path (flat, per tile)
# ---------------------------------------------------------------------------
def _make_upsample_kernel(h_taps, w_lo, w_hi, tile_px):
    lo_idx, fracs = h_taps
    h_hi = len(lo_idx)

    def kernel(x1_ref, x2_ref, w1_ref, w2_ref, awt_ref, b_ref, o_ref,
               lo_scr, up_scr):
        tile = pl.program_id(1)

        # ----- x1 path: runs once per sample, on the first pixel tile. -----
        @pl.when(tile == 0)
        def _x1_path():
            # 1x1 conv at LOW resolution, one lane-dense matmul:
            #   (Cout, C1) @ (C1, H*W) -> (Cout, H*W)
            lo_scr[...] = jnp.dot(w1_ref[...], x1_ref[0],
                                  preferred_element_type=jnp.float32)
            # Bilinear x2 upsample: one pass over the 2H output rows.  Each
            # iteration does a channel-batched 2-tap H-lerp (VPU) and a
            # channel-batched (Cout, W) @ (W, 2W) W-interp matmul (MXU),
            # written directly into the flat (tile, Cout, TP) scratch.
            # All taps/slices are compile-time constants.
            for oh in range(h_hi):
                l, f = lo_idx[oh], fracs[oh]
                r0 = lo_scr[:, l * w_lo:(l + 1) * w_lo]
                if f == 0.0:
                    row = r0
                else:
                    r1 = lo_scr[:, (l + 1) * w_lo:(l + 2) * w_lo]
                    row = r1 if f == 1.0 else (1.0 - f) * r0 + f * r1
                t, off = divmod(oh * w_hi, tile_px)
                up_scr[t, :, off:off + w_hi] = jnp.dot(
                    row, awt_ref[...], preferred_element_type=jnp.float32)

        # ----- hot path: one pixel tile of the high-res output. ------------
        y = jnp.dot(w2_ref[...], x2_ref[0], preferred_element_type=jnp.float32)
        o_ref[0] = jnp.maximum(y + up_scr[tile] + b_ref[...],
                               0.0).astype(o_ref.dtype)

    return kernel


# ---------------------------------------------------------------------------
# No-upsample path: tiled fused concat-conv + BN + ReLU (channel-major).
# ---------------------------------------------------------------------------
def _concat_conv_kernel(x1_ref, x2_ref, w1_ref, w2_ref, b_ref, o_ref):
    acc = jnp.dot(w1_ref[...], x1_ref[0], preferred_element_type=jnp.float32)
    acc = acc + jnp.dot(w2_ref[...], x2_ref[0],
                        preferred_element_type=jnp.float32)
    o_ref[0] = jnp.maximum(acc + b_ref[...], 0.0).astype(o_ref.dtype)


# ---------------------------------------------------------------------------
# decoder_aux forward
# ---------------------------------------------------------------------------
def decoder_aux_forward(x1, x2, params, upsample=True, eps=1e-5,
                        io_dtype=jnp.bfloat16, tile_px=8192):
    n, c1, h, w = x1.shape
    c2 = x2.shape[1]
    cout = params["w"].shape[0]

    # Fold BatchNorm (inference form) into the conv weight + per-channel bias.
    # TODO(synk): training-mode BatchNorm (batch statistics) is not implemented;
    # this matches the module in eval() with running statistics.
    inv_std = 1.0 / jnp.sqrt(params["running_var"].astype(jnp.float32) + eps)
    scale = params["gamma"].astype(jnp.float32) * inv_std                 # (Cout,)
    w_sc = params["w"].astype(jnp.float32) * scale[:, None]               # (Cout, C1+C2)
    bias = (params["beta"].astype(jnp.float32)
            - params["running_mean"].astype(jnp.float32) * scale).reshape(cout, 1)
    w1 = w_sc[:, :c1].astype(io_dtype)                                    # (Cout, C1)
    w2 = w_sc[:, c1:].astype(io_dtype)                                    # (Cout, C2)

    if upsample:
        h2, w2d = 2 * h, 2 * w
        assert x2.shape == (n, c2, h2, w2d), x2.shape
        p_lo, p_hi = h * w, h2 * w2d
        tp = _pick_tile_px(p_hi, w2d, tile_px)          # tile = whole output rows
        n_tiles = p_hi // tp

        awt = _bilinear_matrix(w, w2d).T                # (W, 2W), f32, pre-transposed
        h_taps = _bilinear_taps(h, h2)                  # static Python taps

        x1_flat = x1.astype(io_dtype).reshape(n, c1, p_lo)   # free metadata reshapes
        x2_flat = x2.astype(io_dtype).reshape(n, c2, p_hi)

        kernel = _make_upsample_kernel(h_taps, w, w2d, tp)

        out_flat = pl.pallas_call(
            kernel,
            out_shape=jax.ShapeDtypeStruct((n, cout, p_hi), io_dtype),
            grid=(n, n_tiles),
            in_specs=[
                pl.BlockSpec((1, c1, p_lo), lambda i, j: (i, 0, 0)),
                pl.BlockSpec((1, c2, tp), lambda i, j: (i, 0, j)),
                pl.BlockSpec((cout, c1), lambda i, j: (0, 0)),
                pl.BlockSpec((cout, c2), lambda i, j: (0, 0)),
                pl.BlockSpec((w, w2d), lambda i, j: (0, 0)),
                pl.BlockSpec((cout, 1), lambda i, j: (0, 0)),
            ],
            out_specs=pl.BlockSpec((1, cout, tp), lambda i, j: (i, 0, j)),
            scratch_shapes=[
                pltpu.VMEM((cout, p_lo), jnp.float32),          # low-res conv result
                pltpu.VMEM((n_tiles, cout, tp), jnp.float32),   # upsampled x1 path
            ],
            compiler_params=pltpu.CompilerParams(
                dimension_semantics=("parallel", "arbitrary")),
        )(x1_flat, x2_flat, w1, w2, awt, bias)
        return out_flat.reshape(n, cout, h2, w2d)

    # upsample=False: x1 and x2 share the same spatial size.
    assert x2.shape[2:] == (h, w), x2.shape
    p = h * w
    tp = _pick_tile_px(p, 1, tile_px)
    n_tiles = p // tp
    x1_flat = x1.astype(io_dtype).reshape(n, c1, p)
    x2_flat = x2.astype(io_dtype).reshape(n, c2, p)
    out_flat = pl.pallas_call(
        _concat_conv_kernel,
        out_shape=jax.ShapeDtypeStruct((n, cout, p), io_dtype),
        grid=(n, n_tiles),
        in_specs=[
            pl.BlockSpec((1, c1, tp), lambda i, j: (i, 0, j)),
            pl.BlockSpec((1, c2, tp), lambda i, j: (i, 0, j)),
            pl.BlockSpec((cout, c1), lambda i, j: (0, 0)),
            pl.BlockSpec((cout, c2), lambda i, j: (0, 0)),
            pl.BlockSpec((cout, 1), lambda i, j: (0, 0)),
        ],
        out_specs=pl.BlockSpec((1, cout, tp), lambda i, j: (i, 0, j)),
        compiler_params=pltpu.CompilerParams(
            dimension_semantics=("parallel", "parallel")),
    )(x1_flat, x2_flat, w1, w2, bias)
    return out_flat.reshape(n, cout, h, w)


# ---------------------------------------------------------------------------
# Pure-JAX reference mirroring the PyTorch op order (upsample -> concat ->
# conv -> BN(eval) -> ReLU) for correctness checks of the commuted/fused kernel.
# ---------------------------------------------------------------------------
def _reference(x1, x2, params, upsample=True, eps=1e-5):
    if upsample:
        n, c, h, w = x1.shape
        ah = _bilinear_matrix(h, 2 * h)
        aw = _bilinear_matrix(w, 2 * w)
        x1 = jnp.einsum("oh,nchw->ncow", ah, x1)
        x1 = jnp.einsum("pw,nchw->nchp", aw, x1)
    x = jnp.concatenate([x1, x2], axis=1)
    y = jnp.einsum("oc,nchw->nohw", params["w"], x)
    inv_std = 1.0 / jnp.sqrt(params["running_var"] + eps)
    scale = (params["gamma"] * inv_std)[None, :, None, None]
    bias = (params["beta"]
            - params["running_mean"] * params["gamma"] * inv_std)[None, :, None, None]
    return jnp.maximum(y * scale + bias, 0.0)


if __name__ == "__main__":
    key = jax.random.PRNGKey(0)
    k_x1, k_x2, k_x3, k_w, k_g, k_b, k_m, k_v = jax.random.split(key, 8)

    N, C1, C2, OUT_CH = 2, 4, 4, 8
    H, W = 16, 16                          # x1 spatial; x2 is at 2x resolution
    IN_CH = C1 + C2

    x1 = jax.random.normal(k_x1, (N, C1, H, W), dtype=jnp.float32)
    x2 = jax.random.normal(k_x2, (N, C2, 2 * H, 2 * W), dtype=jnp.float32)
    x2_same = jax.random.normal(k_x3, (N, C2, H, W), dtype=jnp.float32)

    params = {
        "w": jax.random.normal(k_w, (OUT_CH, IN_CH), dtype=jnp.float32) * 0.1,  # 1x1 conv, bias=False
        "gamma": 1.0 + 0.1 * jax.random.normal(k_g, (OUT_CH,), dtype=jnp.float32),
        "beta": 0.05 * jax.random.normal(k_b, (OUT_CH,), dtype=jnp.float32),
        "running_mean": 0.1 * jax.random.normal(k_m, (OUT_CH,), dtype=jnp.float32),
        "running_var": jax.random.uniform(k_v, (OUT_CH,), minval=0.5, maxval=1.5,
                                          dtype=jnp.float32),
    }

    ref_up = _reference(x1, x2, params, upsample=True)

    # 1) default bf16 I/O with a small pixel tile -> multi-tile grid per sample
    #    (exercises pl.when(tile == 0), persistent scratch and pipelining).
    out_bf16 = decoder_aux_forward(x1, x2, params, upsample=True, tile_px=512)
    out_bf16 = jax.block_until_ready(out_bf16)
    assert out_bf16.shape == (N, OUT_CH, 2 * H, 2 * W), out_bf16.shape
    err = float(jnp.max(jnp.abs(out_bf16.astype(jnp.float32) - ref_up)))
    assert err < 7.5e-2, err                       # bf16 I/O rounding headroom

    # 2) f32 I/O, default tile (single tile per sample) -> tight parity check
    #    of the commuted upsample/conv math.
    out_f32 = decoder_aux_forward(x1, x2, params, upsample=True,
                                  io_dtype=jnp.float32)
    out_f32 = jax.block_until_ready(out_f32)
    assert jnp.allclose(out_f32, ref_up, atol=1e-4, rtol=1e-4), \
        float(jnp.max(jnp.abs(out_f32 - ref_up)))

    # 3) upsample=False path, f32.
    ref_nu = _reference(x1, x2_same, params, upsample=False)
    out_nu = decoder_aux_forward(x1, x2_same, params, upsample=False,
                                 io_dtype=jnp.float32)
    out_nu = jax.block_until_ready(out_nu)
    assert out_nu.shape == (N, OUT_CH, H, W), out_nu.shape
    assert jnp.allclose(out_nu, ref_nu, atol=1e-4, rtol=1e-4), \
        float(jnp.max(jnp.abs(out_nu - ref_nu)))

    print("KERNEL_OK")
</pallas_src>

<mosaic_0001>
module attributes {stable_mosaic.version = 11 : i64} {
  func.func @kernel(%arg0: i32, %arg1: i32, %arg2: memref<1x4x256xbf16, #tpu.memory_space<vmem>>, %arg3: memref<1x4x512xbf16, #tpu.memory_space<vmem>>, %arg4: memref<8x4xbf16, #tpu.memory_space<vmem>>, %arg5: memref<8x4xbf16, #tpu.memory_space<vmem>>, %arg6: memref<16x32xf32, #tpu.memory_space<vmem>>, %arg7: memref<8x1xf32, #tpu.memory_space<vmem>>, %arg8: memref<1x8x512xbf16, #tpu.memory_space<vmem>>, %arg9: memref<8x256xf32, #tpu.memory_space<vmem>>, %arg10: memref<2x8x512xf32, #tpu.memory_space<vmem>>) attributes {dimension_semantics = [#tpu.dimension_semantics<parallel>, #tpu.dimension_semantics<arbitrary>], iteration_bounds = array<i64: 2, 2>, scalar_prefetch = 0 : i64, scratch_operands = 2 : i64, tpu.core_type = #tpu.core_type<tc>, window_params = [{transform_indices = @transform_0, window_bounds = array<i64: 1, 4, 256>}, {transform_indices = @transform_1, window_bounds = array<i64: 1, 4, 512>}, {pipeline_mode = #tpu.pipeline_mode<synchronous>, transform_indices = @transform_2, window_bounds = array<i64: 8, 4>}, {pipeline_mode = #tpu.pipeline_mode<synchronous>, transform_indices = @transform_3, window_bounds = array<i64: 8, 4>}, {pipeline_mode = #tpu.pipeline_mode<synchronous>, transform_indices = @transform_4, window_bounds = array<i64: 16, 32>}, {pipeline_mode = #tpu.pipeline_mode<synchronous>, transform_indices = @transform_5, window_bounds = array<i64: 8, 1>}, {transform_indices = @transform_6, window_bounds = array<i64: 1, 8, 512>}]} {
    %c0_i32 = arith.constant 0 : i32
    %0 = arith.cmpi eq, %arg1, %c0_i32 : i32
    %1 = arith.extui %0 : i1 to i32
    %c0_i32_0 = arith.constant 0 : i32
    %2 = arith.cmpi ne, %1, %c0_i32_0 : i32
    scf.if %2 {
      %c0_13 = arith.constant 0 : index
      %c0_14 = arith.constant 0 : index
      %20 = vector.load %arg4[%c0_13, %c0_14] : memref<8x4xbf16, #tpu.memory_space<vmem>>, vector<8x4xbf16>
      %c0_15 = arith.constant 0 : index
      %c0_16 = arith.constant 0 : index
      %c0_17 = arith.constant 0 : index
      %21 = vector.load %arg2[%c0_15, %c0_16, %c0_17] : memref<1x4x256xbf16, #tpu.memory_space<vmem>>, vector<1x4x256xbf16>
      %22 = vector.shape_cast %21 : vector<1x4x256xbf16> to vector<4x256xbf16>
      %cst_18 = arith.constant dense<0.000000e+00> : vector<8x256xf32>
      %23 = tpu.matmul %20, %22, %cst_18 {dimension_numbers = #tpu.dot_dimension_numbers<[1], [0], [0], [1], [0, 0, 1, 1], [], []>} : vector<8x4xbf16>, vector<4x256xbf16>, vector<8x256xf32> -> vector<8x256xf32>
      %c0_19 = arith.constant 0 : index
      %c0_20 = arith.constant 0 : index
      %24 = vector.load %arg9[%c0_19, %c0_20] : memref<8x256xf32, #tpu.memory_space<vmem>>, vector<8x256xf32>
      tpu.vector_store %arg9[%c0_19, %c0_20], %23 {strides = array<i32>} : memref<8x256xf32, #tpu.memory_space<vmem>>, vector<8x256xf32>,
      %c0_21 = arith.constant 0 : index
      %c0_22 = arith.constant 0 : index
      %25 = vector.load %arg9[%c0_21, %c0_22] : memref<8x256xf32, #tpu.memory_space<vmem>>, vector<8x16xf32>
      %c0_23 = arith.constant 0 : index
      %c0_24 = arith.constant 0 : index
      %26 = vector.load %arg6[%c0_23, %c0_24] : memref<16x32xf32, #tpu.memory_space<vmem>>, vector<16x32xf32>
      %cst_25 = arith.constant dense<0.000000e+00> : vector<8x32xf32>
      %27 = tpu.matmul %25, %26, %cst_25 {dimension_numbers = #tpu.dot_dimension_numbers<[1], [0], [0], [1], [0, 0, 1, 1], [], []>} : vector<8x16xf32>, vector<16x32xf32>, vector<8x32xf32> -> vector<8x32xf32>
      %c0_26 = arith.constant 0 : index
      %c0_27 = arith.constant 0 : index
      %c0_28 = arith.constant 0 : index
      %28 = vector.load %arg10[%c0_26, %c0_27, %c0_28] : memref<2x8x512xf32, #tpu.memory_space<vmem>>, vector<1x8x32xf32>
      %29 = vector.shape_cast %28 : vector<1x8x32xf32> to vector<8x32xf32>
      %30 = vector.shape_cast %27 : vector<8x32xf32> to vector<1x8x32xf32>
      tpu.vector_store %arg10[%c0_26, %c0_27, %c0_28], %30 {strides = array<i32>} : memref<2x8x512xf32, #tpu.memory_space<vmem>>, vector<1x8x32xf32>,
      %c0_29 = arith.constant 0 : index
      %c0_30 = arith.constant 0 : index
      %31 = vector.load %arg9[%c0_29, %c0_30] : memref<8x256xf32, #tpu.memory_space<vmem>>, vector<8x16xf32>
      %c0_31 = arith.constant 0 : index
      %c16 = arith.constant 16 : index
      %32 = vector.load %arg9[%c0_31, %c16] : memref<8x256xf32, #tpu.memory_space<vmem>>, vector<8x16xf32>
      %cst_32 = arith.constant 5.161290e-01 : f32
      %33 = vector.broadcast %cst_32 : f32 to vector<8x16xf32>
      %34 = arith.mulf %33, %31 : vector<8x16xf32>
      %cst_33 = arith.constant 0.483870953 : f32
      %35 = vector.broadcast %cst_33 : f32 to vector<8x16xf32>
      %36 = arith.mulf %35, %32 : vector<8x16xf32>
      %37 = arith.addf %34, %36 : vector<8x16xf32>
      %c0_34 = arith.constant 0 : index
      %c0_35 = arith.constant 0 : index
      %38 = vector.load %arg6[%c0_34, %c0_35] : memref<16x32xf32, #tpu.memory_space<vmem>>, vector<16x32xf32>
      %cst_36 = arith.constant dense<0.000000e+00> : vector<8x32xf32>
      %39 = tpu.matmul %37, %38, %cst_36 {dimension_numbers = #tpu.dot_dimension_numbers<[1], [0], [0], [1], [0, 0, 1, 1], [], []>} : vector<8x16xf32>, vector<16x32xf32>, vector<8x32xf32> -> vector<8x32xf32>
      %c0_37 = arith.constant 0 : index
      %c0_38 = arith.constant 0 : index
      %c32 = arith.constant 32 : index
      %40 = vector.load %arg10[%c0_37, %c0_38, %c32] : memref<2x8x512xf32, #tpu.memory_space<vmem>>, vector<1x8x32xf32>
      %41 = vector.shape_cast %40 : vector<1x8x32xf32> to vector<8x32xf32>
      %42 = vector.shape_cast %39 : vector<8x32xf32> to vector<1x8x32xf32>
      tpu.vector_store %arg10[%c0_37, %c0_38, %c32], %42 {strides = array<i32>} : memref<2x8x512xf32, #tpu.memory_space<vmem>>, vector<1x8x32xf32>,
      %c0_39 = arith.constant 0 : index
      %c0_40 = arith.constant 0 : index
      %43 = vector.load %arg9[%c0_39, %c0_40] : memref<8x256xf32, #tpu.memory_space<vmem>>, vector<8x16xf32>
      %c0_41 = arith.constant 0 : index
      %c16_42 = arith.constant 16 : index
      %44 = vector.load %arg9[%c0_41, %c16_42] : memref<8x256xf32, #tpu.memory_space<vmem>>, vector<8x16xf32>
      %cst_43 = arith.constant 0.0322580636 : f32
      %45 = vector.broadcast %cst_43 : f32 to vector<8x16xf32>
      %46 = arith.mulf %45, %43 : vector<8x16xf32>
      %cst_44 = arith.constant 0.967741906 : f32
      %47 = vector.broadcast %cst_44 : f32 to vector<8x16xf32>
      %48 = arith.mulf %47, %44 : vector<8x16xf32>
      %49 = arith.addf %46, %48 : vector<8x16xf32>
      %c0_45 = arith.constant 0 : index
      %c0_46 = arith.constant 0 : index
      %50 = vector.load %arg6[%c0_45, %c0_46] : memref<16x32xf32, #tpu.memory_space<vmem>>, vector<16x32xf32>
      %cst_47 = arith.constant dense<0.000000e+00> : vector<8x32xf32>
      %51 = tpu.matmul %49, %50, %cst_47 {dimension_numbers = #tpu.dot_dimension_numbers<[1], [0], [0], [1], [0, 0, 1, 1], [], []>} : vector<8x16xf32>, vector<16x32xf32>, vector<8x32xf32> -> vector<8x32xf32>
      %c0_48 = arith.constant 0 : index
      %c0_49 = arith.constant 0 : index
      %c64 = arith.constant 64 : index
      %52 = vector.load %arg10[%c0_48, %c0_49, %c64] : memref<2x8x512xf32, #tpu.memory_space<vmem>>, vector<1x8x32xf32>
      %53 = vector.shape_cast %52 : vector<1x8x32xf32> to vector<8x32xf32>
      %54 = vector.shape_cast %51 : vector<8x32xf32> to vector<1x8x32xf32>
      tpu.vector_store %arg10[%c0_48, %c0_49, %c64], %54 {strides = array<i32>} : memref<2x8x512xf32, #tpu.memory_space<vmem>>, vector<1x8x32xf32>,
      %c0_50 = arith.constant 0 : index
      %c16_51 = arith.constant 16 : index
      %55 = vector.load %arg9[%c0_50, %c16_51] : memref<8x256xf32, #tpu.memory_space<vmem>>, vector<8x16xf32>
      %c0_52 = arith.constant 0 : index
      %c32_53 = arith.constant 32 : index
      %56 = vector.load %arg9[%c0_52, %c32_53] : memref<8x256xf32, #tpu.memory_space<vmem>>, vector<8x16xf32>
      %cst_54 = arith.constant 0.54838711 : f32
      %57 = vector.broadcast %cst_54 : f32 to vector<8x16xf32>
      %58 = arith.mulf %57, %55 : vector<8x16xf32>
      %cst_55 = arith.constant 0.45161289 : f32
      %59 = vector.broadcast %cst_55 : f32 to vector<8x16xf32>
      %60 = arith.mulf %59, %56 : vector<8x16xf32>
      %61 = arith.addf %58, %60 : vector<8x16xf32>
      %c0_56 = arith.constant 0 : index
      %c0_57 = arith.constant 0 : index
      %62 = vector.load %arg6[%c0_56, %c0_57] : memref<16x32xf32, #tpu.memory_space<vmem>>, vector<16x32xf32>
      %cst_58 = arith.constant dense<0.000000e+00> : vector<8x32xf32>
      %63 = tpu.matmul %61, %62, %cst_58 {dimension_numbers = #tpu.dot_dimension_numbers<[1], [0], [0], [1], [0, 0, 1, 1], [], []>} : vector<8x16xf32>, vector<16x32xf32>, vector<8x32xf32> -> vector<8x32xf32>
      %c0_59 = arith.constant 0 : index
      %c0_60 = arith.constant 0 : index
      %c96 = arith.constant 96 : index
      %64 = vector.load %arg10[%c0_59, %c0_60, %c96] : memref<2x8x512xf32, #tpu.memory_space<vmem>>, vector<1x8x32xf32>
      %65 = vector.shape_cast %64 : vector<1x8x32xf32> to vector<8x32xf32>
      %66 = vector.shape_cast %63 : vector<8x32xf32> to vector<1x8x32xf32>
      tpu.vector_store %arg10[%c0_59, %c0_60, %c96], %66 {strides = array<i32>} : memref<2x8x512xf32, #tpu.memory_space<vmem>>, vector<1x8x32xf32>,
      %c0_61 = arith.constant 0 : index
      %c16_62 = arith.constant 16 : index
      %67 = vector.load %arg9[%c0_61, %c16_62] : memref<8x256xf32, #tpu.memory_space<vmem>>, vector<8x16xf32>
      %c0_63 = arith.constant 0 : index
      %c32_64 = arith.constant 32 : index
      %68 = vector.load %arg9[%c0_63, %c32_64] : memref<8x256xf32, #tpu.memory_space<vmem>>, vector<8x16xf32>
      %cst_65 = arith.constant 0.0645161271 : f32
      %69 = vector.broadcast %cst_65 : f32 to vector<8x16xf32>
      %70 = arith.mulf %69, %67 : vector<8x16xf32>
      %cst_66 = arith.constant 0.935483872 : f32
      %71 = vector.broadcast %cst_66 : f32 to vector<8x16xf32>
      %72 = arith.mulf %71, %68 : vector<8x16xf32>
      %73 = arith.addf %70, %72 : vector<8x16xf32>
      %c0_67 = arith.constant 0 : index
      %c0_68 = arith.constant 0 : index
      %74 = vector.load %arg6[%c0_67, %c0_68] : memref<16x32xf32, #tpu.memory_space<vmem>>, vector<16x32xf32>
      %cst_69 = arith.constant dense<0.000000e+00> : vector<8x32xf32>
      %75 = tpu.matmul %73, %74, %cst_69 {dimension_numbers = #tpu.dot_dimension_numbers<[1], [0], [0], [1], [0, 0, 1, 1], [], []>} : vector<8x16xf32>, vector<16x32xf32>, vector<8x32xf32> -> vector<8x32xf32>
      %c0_70 = arith.constant 0 : index
      %c0_71 = arith.constant 0 : index
      %c128 = arith.constant 128 : index
      %76 = vector.load %arg10[%c0_70, %c0_71, %c128] : memref<2x8x512xf32, #tpu.memory_space<vmem>>, vector<1x8x32xf32>
      %77 = vector.shape_cast %76 : vector<1x8x32xf32> to vector<8x32xf32>
      %78 = vector.shape_cast %75 : vector<8x32xf32> to vector<1x8x32xf32>
      tpu.vector_store %arg10[%c0_70, %c0_71, %c128], %78 {strides = array<i32>} : memref<2x8x512xf32, #tpu.memory_space<vmem>>, vector<1x8x32xf32>,
      %c0_72 = arith.constant 0 : index
      %c32_73 = arith.constant 32 : index
      %79 = vector.load %arg9[%c0_72, %c32_73] : memref<8x256xf32, #tpu.memory_space<vmem>>, vector<8x16xf32>
      %c0_74 = arith.constant 0 : index
      %c48 = arith.constant 48 : index
      %80 = vector.load %arg9[%c0_74, %c48] : memref<8x256xf32, #tpu.memory_space<vmem>>, vector<8x16xf32>
      %cst_75 = arith.constant 0.580645144 : f32
      %81 = vector.broadcast %cst_75 : f32 to vector<8x16xf32>
      %82 = arith.mulf %81, %79 : vector<8x16xf32>
      %cst_76 = arith.constant 0.419354826 : f32
      %83 = vector.broadcast %cst_76 : f32 to vector<8x16xf32>
      %84 = arith.mulf %83, %80 : vector<8x16xf32>
      %85 = arith.addf %82, %84 : vector<8x16xf32>
      %c0_77 = arith.constant 0 : index
      %c0_78 = arith.constant 0 : index
      %86 = vector.load %arg6[%c0_77, %c0_78] : memref<16x32xf32, #tpu.memory_space<vmem>>, vector<16x32xf32>
      %cst_79 = arith.constant dense<0.000000e+00> : vector<8x32xf32>
      %87 = tpu.matmul %85, %86, %cst_79 {dimension_numbers = #tpu.dot_dimension_numbers<[1], [0], [0], [1], [0, 0, 1, 1], [], []>} : vector<8x16xf32>, vector<16x32xf32>, vector<8x32xf32> -> vector<8x32xf32>
      %c0_80 = arith.constant 0 : index
      %c0_81 = arith.constant 0 : index
      %c160 = arith.constant 160 : index
      %88 = vector.load %arg10[%c0_80, %c0_81, %c160] : memref<2x8x512xf32, #tpu.memory_space<vmem>>, vector<1x8x32xf32>
      %89 = vector.shape_cast %88 : vector<1x8x32xf32> to vector<8x32xf32>
      %90 = vector.shape_cast %87 : vector<8x32xf32> to vector<1x8x32xf32>
      tpu.vector_store %arg10[%c0_80, %c0_81, %c160], %90 {strides = array<i32>} : memref<2x8x512xf32, #tpu.memory_space<vmem>>, vector<1x8x32xf32>,
      %c0_82 = arith.constant 0 : index
      %c32_83 = arith.constant 32 : index
      %91 = vector.load %arg9[%c0_82, %c32_83] : memref<8x256xf32, #tpu.memory_space<vmem>>, vector<8x16xf32>
      %c0_84 = arith.constant 0 : index
      %c48_85 = arith.constant 48 : index
      %92 = vector.load %arg9[%c0_84, %c48_85] : memref<8x256xf32, #tpu.memory_space<vmem>>, vector<8x16xf32>
      %cst_86 = arith.constant 0.0967741906 : f32
      %93 = vector.broadcast %cst_86 : f32 to vector<8x16xf32>
      %94 = arith.mulf %93, %91 : vector<8x16xf32>
      %cst_87 = arith.constant 0.903225779 : f32
      %95 = vector.broadcast %cst_87 : f32 to vector<8x16xf32>
      %96 = arith.mulf %95, %92 : vector<8x16xf32>
      %97 = arith.addf %94, %96 : vector<8x16xf32>
      %c0_88 = arith.constant 0 : index
      %c0_89 = arith.constant 0 : index
      %98 = vector.load %arg6[%c0_88, %c0_89] : memref<16x32xf32, #tpu.memory_space<vmem>>, vector<16x32xf32>
      %cst_90 = arith.constant dense<0.000000e+00> : vector<8x32xf32>
      %99 = tpu.matmul %97, %98, %cst_90 {dimension_numbers = #tpu.dot_dimension_numbers<[1], [0], [0], [1], [0, 0, 1, 1], [], []>} : vector<8x16xf32>, vector<16x32xf32>, vector<8x32xf32> -> vector<8x32xf32>
      %c0_91 = arith.constant 0 : index
      %c0_92 = arith.constant 0 : index
      %c192 = arith.constant 192 : index
      %100 = vector.load %arg10[%c0_91, %c0_92, %c192] : memref<2x8x512xf32, #tpu.memory_space<vmem>>, vector<1x8x32xf32>
      %101 = vector.shape_cast %100 : vector<1x8x32xf32> to vector<8x32xf32>
      %102 = vector.shape_cast %99 : vector<8x32xf32> to vector<1x8x32xf32>
      tpu.vector_store %arg10[%c0_91, %c0_92, %c192], %102 {strides = array<i32>} : memref<2x8x512xf32, #tpu.memory_space<vmem>>, vector<1x8x32xf32>,
      %c0_93 = arith.constant 0 : index
      %c48_94 = arith.constant 48 : index
      %103 = vector.load %arg9[%c0_93, %c48_94] : memref<8x256xf32, #tpu.memory_space<vmem>>, vector<8x16xf32>
      %c0_95 = arith.constant 0 : index
      %c64_96 = arith.constant 64 : index
      %104 = vector.load %arg9[%c0_95, %c64_96] : memref<8x256xf32, #tpu.memory_space<vmem>>, vector<8x16xf32>
      %cst_97 = arith.constant 0.612903237 : f32
      %105 = vector.broadcast %cst_97 : f32 to vector<8x16xf32>
      %106 = arith.mulf %105, %103 : vector<8x16xf32>
      %cst_98 = arith.constant 0.387096763 : f32
      %107 = vector.broadcast %cst_98 : f32 to vector<8x16xf32>
      %108 = arith.mulf %107, %104 : vector<8x16xf32>
      %109 = arith.addf %106, %108 : vector<8x16xf32>
      %c0_99 = arith.constant 0 : index
      %c0_100 = arith.constant 0 : index
      %110 = vector.load %arg6[%c0_99, %c0_100] : memref<16x32xf32, #tpu.memory_space<vmem>>, vector<16x32xf32>
      %cst_101 = arith.constant dense<0.000000e+00> : vector<8x32xf32>
      %111 = tpu.matmul %109, %110, %cst_101 {dimension_numbers = #tpu.dot_dimension_numbers<[1], [0], [0], [1], [0, 0, 1, 1], [], []>} : vector<8x16xf32>, vector<16x32xf32>, vector<8x32xf32> -> vector<8x32xf32>
      %c0_102 = arith.constant 0 : index
      %c0_103 = arith.constant 0 : index
      %c224 = arith.constant 224 : index
      %112 = vector.load %arg10[%c0_102, %c0_103, %c224] : memref<2x8x512xf32, #tpu.memory_space<vmem>>, vector<1x8x32xf32>
      %113 = vector.shape_cast %112 : vector<1x8x32xf32> to vector<8x32xf32>
      %114 = vector.shape_cast %111 : vector<8x32xf32> to vector<1x8x32xf32>
      tpu.vector_store %arg10[%c0_102, %c0_103, %c224], %114 {strides = array<i32>} : memref<2x8x512xf32, #tpu.memory_space<vmem>>, vector<1x8x32xf32>,
      %c0_104 = arith.constant 0 : index
      %c48_105 = arith.constant 48 : index
      %115 = vector.load %arg9[%c0_104, %c48_105] : memref<8x256xf32, #tpu.memory_space<vmem>>, vector<8x16xf32>
      %c0_106 = arith.constant 0 : index
      %c64_107 = arith.constant 64 : index
      %116 = vector.load %arg9[%c0_106, %c64_107] : memref<8x256xf32, #tpu.memory_space<vmem>>, vector<8x16xf32>
      %cst_108 = arith.constant 0.129032254 : f32
      %117 = vector.broadcast %cst_108 : f32 to vector<8x16xf32>
      %118 = arith.mulf %117, %115 : vector<8x16xf32>
      %cst_109 = arith.constant 0.870967745 : f32
      %119 = vector.broadcast %cst_109 : f32 to vector<8x16xf32>
      %120 = arith.mulf %119, %116 : vector<8x16xf32>
      %121 = arith.addf %118, %120 : vector<8x16xf32>
      %c0_110 = arith.constant 0 : index
      %c0_111 = arith.constant 0 : index
      %122 = vector.load %arg6[%c0_110, %c0_111] : memref<16x32xf32, #tpu.memory_space<vmem>>, vector<16x32xf32>
      %cst_112 = arith.constant dense<0.000000e+00> : vector<8x32xf32>
      %123 = tpu.matmul %121, %122, %cst_112 {dimension_numbers = #tpu.dot_dimension_numbers<[1], [0], [0], [1], [0, 0, 1, 1], [], []>} : vector<8x16xf32>, vector<16x32xf32>, vector<8x32xf32> -> vector<8x32xf32>
      %c0_113 = arith.constant 0 : index
      %c0_114 = arith.constant 0 : index
      %c256 = arith.constant 256 : index
      %124 = vector.load %arg10[%c0_113, %c0_114, %c256] : memref<2x8x512xf32, #tpu.memory_space<vmem>>, vector<1x8x32xf32>
      %125 = vector.shape_cast %124 : vector<1x8x32xf32> to vector<8x32xf32>
      %126 = vector.shape_cast %123 : vector<8x32xf32> to vector<1x8x32xf32>
      tpu.vector_store %arg10[%c0_113, %c0_114, %c256], %126 {strides = array<i32>} : memref<2x8x512xf32, #tpu.memory_space<vmem>>, vector<1x8x32xf32>,
      %c0_115 = arith.constant 0 : index
      %c64_116 = arith.constant 64 : index
      %127 = vector.load %arg9[%c0_115, %c64_116] : memref<8x256xf32, #tpu.memory_space<vmem>>, vector<8x16xf32>
      %c0_117 = arith.constant 0 : index
      %c80 = arith.constant 80 : index
      %128 = vector.load %arg9[%c0_117, %c80] : memref<8x256xf32, #tpu.memory_space<vmem>>, vector<8x16xf32>
      %cst_118 = arith.constant 0.645161271 : f32
      %129 = vector.broadcast %cst_118 : f32 to vector<8x16xf32>
      %130 = arith.mulf %129, %127 : vector<8x16xf32>
      %cst_119 = arith.constant 0.354838699 : f32
      %131 = vector.broadcast %cst_119 : f32 to vector<8x16xf32>
      %132 = arith.mulf %131, %128 : vector<8x16xf32>
      %133 = arith.addf %130, %132 : vector<8x16xf32>
      %c0_120 = arith.constant 0 : index
      %c0_121 = arith.constant 0 : index
      %134 = vector.load %arg6[%c0_120, %c0_121] : memref<16x32xf32, #tpu.memory_space<vmem>>, vector<16x32xf32>
      %cst_122 = arith.constant dense<0.000000e+00> : vector<8x32xf32>
      %135 = tpu.matmul %133, %134, %cst_122 {dimension_numbers = #tpu.dot_dimension_numbers<[1], [0], [0], [1], [0, 0, 1, 1], [], []>} : vector<8x16xf32>, vector<16x32xf32>, vector<8x32xf32> -> vector<8x32xf32>
      %c0_123 = arith.constant 0 : index
      %c0_124 = arith.constant 0 : index
      %c288 = arith.constant 288 : index
      %136 = vector.load %arg10[%c0_123, %c0_124, %c288] : memref<2x8x512xf32, #tpu.memory_space<vmem>>, vector<1x8x32xf32>
      %137 = vector.shape_cast %136 : vector<1x8x32xf32> to vector<8x32xf32>
      %138 = vector.shape_cast %135 : vector<8x32xf32> to vector<1x8x32xf32>
      tpu.vector_store %arg10[%c0_123, %c0_124, %c288], %138 {strides = array<i32>} : memref<2x8x512xf32, #tpu.memory_space<vmem>>, vector<1x8x32xf32>,
      %c0_125 = arith.constant 0 : index
      %c64_126 = arith.constant 64 : index
      %139 = vector.load %arg9[%c0_125, %c64_126] : memref<8x256xf32, #tpu.memory_space<vmem>>, vector<8x16xf32>
      %c0_127 = arith.constant 0 : index
      %c80_128 = arith.constant 80 : index
      %140 = vector.load %arg9[%c0_127, %c80_128] : memref<8x256xf32, #tpu.memory_space<vmem>>, vector<8x16xf32>
      %cst_129 = arith.constant 0.161290318 : f32
      %141 = vector.broadcast %cst_129 : f32 to vector<8x16xf32>
      %142 = arith.mulf %141, %139 : vector<8x16xf32>
      %cst_130 = arith.constant 0.838709652 : f32
      %143 = vector.broadcast %cst_130 : f32 to vector<8x16xf32>
      %144 = arith.mulf %143, %140 : vector<8x16xf32>
      %145 = arith.addf %142, %144 : vector<8x16xf32>
      %c0_131 = arith.constant 0 : index
      %c0_132 = arith.constant 0 : index
      %146 = vector.load %arg6[%c0_131, %c0_132] : memref<16x32xf32, #tpu.memory_space<vmem>>, vector<16x32xf32>
      %cst_133 = arith.constant dense<0.000000e+00> : vector<8x32xf32>
      %147 = tpu.matmul %145, %146, %cst_133 {dimension_numbers = #tpu.dot_dimension_numbers<[1], [0], [0], [1], [0, 0, 1, 1], [], []>} : vector<8x16xf32>, vector<16x32xf32>, vector<8x32xf32> -> vector<8x32xf32>
      %c0_134 = arith.constant 0 : index
      %c0_135 = arith.constant 0 : index
      %c320 = arith.constant 320 : index
      %148 = vector.load %arg10[%c0_134, %c0_135, %c320] : memref<2x8x512xf32, #tpu.memory_space<vmem>>, vector<1x8x32xf32>
      %149 = vector.shape_cast %148 : vector<1x8x32xf32> to vector<8x32xf32>
      %150 = vector.shape_cast %147 : vector<8x32xf32> to vector<1x8x32xf32>
      tpu.vector_store %arg10[%c0_134, %c0_135, %c320], %150 {strides = array<i32>} : memref<2x8x512xf32, #tpu.memory_space<vmem>>, vector<1x8x32xf32>,
      %c0_136 = arith.constant 0 : index
      %c80_137 = arith.constant 80 : index
      %151 = vector.load %arg9[%c0_136, %c80_137] : memref<8x256xf32, #tpu.memory_space<vmem>>, vector<8x16xf32>
      %c0_138 = arith.constant 0 : index
      %c96_139 = arith.constant 96 : index
      %152 = vector.load %arg9[%c0_138, %c96_139] : memref<8x256xf32, #tpu.memory_space<vmem>>, vector<8x16xf32>
      %cst_140 = arith.constant 0.677419364 : f32
      %153 = vector.broadcast %cst_140 : f32 to vector<8x16xf32>
      %154 = arith.mulf %153, %151 : vector<8x16xf32>
      %cst_141 = arith.constant 0.322580636 : f32
      %155 = vector.broadcast %cst_141 : f32 to vector<8x16xf32>
      %156 = arith.mulf %155, %152 : vector<8x16xf32>
      %157 = arith.addf %154, %156 : vector<8x16xf32>
      %c0_142 = arith.constant 0 : index
      %c0_143 = arith.constant 0 : index
      %158 = vector.load %arg6[%c0_142, %c0_143] : memref<16x32xf32, #tpu.memory_space<vmem>>, vector<16x32xf32>
      %cst_144 = arith.constant dense<0.000000e+00> : vector<8x32xf32>
      %159 = tpu.matmul %157, %158, %cst_144 {dimension_numbers = #tpu.dot_dimension_numbers<[1], [0], [0], [1], [0, 0, 1, 1], [], []>} : vector<8x16xf32>, vector<16x32xf32>, vector<8x32xf32> -> vector<8x32xf32>
      %c0_145 = arith.constant 0 : index
      %c0_146 = arith.constant 0 : index
      %c352 = arith.constant 352 : index
      %160 = vector.load %arg10[%c0_145, %c0_146, %c352] : memref<2x8x512xf32, #tpu.memory_space<vmem>>, vector<1x8x32xf32>
      %161 = vector.shape_cast %160 : vector<1x8x32xf32> to vector<8x32xf32>
      %162 = vector.shape_cast %159 : vector<8x32xf32> to vector<1x8x32xf32>
      tpu.vector_store %arg10[%c0_145, %c0_146, %c352], %162 {strides = array<i32>} : memref<2x8x512xf32, #tpu.memory_space<vmem>>, vector<1x8x32xf32>,
      %c0_147 = arith.constant 0 : index
      %c80_148 = arith.constant 80 : index
      %163 = vector.load %arg9[%c0_147, %c80_148] : memref<8x256xf32, #tpu.memory_space<vmem>>, vector<8x16xf32>
      %c0_149 = arith.constant 0 : index
      %c96_150 = arith.constant 96 : index
      %164 = vector.load %arg9[%c0_149, %c96_150] : memref<8x256xf32, #tpu.memory_space<vmem>>, vector<8x16xf32>
      %cst_151 = arith.constant 0.193548381 : f32
      %165 = vector.broadcast %cst_151 : f32 to vector<8x16xf32>
      %166 = arith.mulf %165, %163 : vector<8x16xf32>
      %cst_152 = arith.constant 0.806451618 : f32
      %167 = vector.broadcast %cst_152 : f32 to vector<8x16xf32>
      %168 = arith.mulf %167, %164 : vector<8x16xf32>
      %169 = arith.addf %166, %168 : vector<8x16xf32>
      %c0_153 = arith.constant 0 : index
      %c0_154 = arith.constant 0 : index
      %170 = vector.load %arg6[%c0_153, %c0_154] : memref<16x32xf32, #tpu.memory_space<vmem>>, vector<16x32xf32>
      %cst_155 = arith.constant dense<0.000000e+00> : vector<8x32xf32>
      %171 = tpu.matmul %169, %170, %cst_155 {dimension_numbers = #tpu.dot_dimension_numbers<[1], [0], [0], [1], [0, 0, 1, 1], [], []>} : vector<8x16xf32>, vector<16x32xf32>, vector<8x32xf32> -> vector<8x32xf32>
      %c0_156 = arith.constant 0 : index
      %c0_157 = arith.constant 0 : index
      %c384 = arith.constant 384 : index
      %172 = vector.load %arg10[%c0_156, %c0_157, %c384] : memref<2x8x512xf32, #tpu.memory_space<vmem>>, vector<1x8x32xf32>
      %173 = vector.shape_cast %172 : vector<1x8x32xf32> to vector<8x32xf32>
      %174 = vector.shape_cast %171 : vector<8x32xf32> to vector<1x8x32xf32>
      tpu.vector_store %arg10[%c0_156, %c0_157, %c384], %174 {strides = array<i32>} : memref<2x8x512xf32, #tpu.memory_space<vmem>>, vector<1x8x32xf32>,
      %c0_158 = arith.constant 0 : index
      %c96_159 = arith.constant 96 : index
      %175 = vector.load %arg9[%c0_158, %c96_159] : memref<8x256xf32, #tpu.memory_space<vmem>>, vector<8x16xf32>
      %c0_160 = arith.constant 0 : index
      %c112 = arith.constant 112 : index
      %176 = vector.load %arg9[%c0_160, %c112] : memref<8x256xf32, #tpu.memory_space<vmem>>, vector<8x16xf32>
      %cst_161 = arith.constant 0.709677398 : f32
      %177 = vector.broadcast %cst_161 : f32 to vector<8x16xf32>
      %178 = arith.mulf %177, %175 : vector<8x16xf32>
      %cst_162 = arith.constant 0.290322572 : f32
      %179 = vector.broadcast %cst_162 : f32 to vector<8x16xf32>
      %180 = arith.mulf %179, %176 : vector<8x16xf32>
      %181 = arith.addf %178, %180 : vector<8x16xf32>
      %c0_163 = arith.constant 0 : index
      %c0_164 = arith.constant 0 : index
      %182 = vector.load %arg6[%c0_163, %c0_164] : memref<16x32xf32, #tpu.memory_space<vmem>>, vector<16x32xf32>
      %cst_165 = arith.constant dense<0.000000e+00> : vector<8x32xf32>
      %183 = tpu.matmul %181, %182, %cst_165 {dimension_numbers = #tpu.dot_dimension_numbers<[1], [0], [0], [1], [0, 0, 1, 1], [], []>} : vector<8x16xf32>, vector<16x32xf32>, vector<8x32xf32> -> vector<8x32xf32>
      %c0_166 = arith.constant 0 : index
      %c0_167 = arith.constant 0 : index
      %c416 = arith.constant 416 : index
      %184 = vector.load %arg10[%c0_166, %c0_167, %c416] : memref<2x8x512xf32, #tpu.memory_space<vmem>>, vector<1x8x32xf32>
      %185 = vector.shape_cast %184 : vector<1x8x32xf32> to vector<8x32xf32>
      %186 = vector.shape_cast %183 : vector<8x32xf32> to vector<1x8x32xf32>
      tpu.vector_store %arg10[%c0_166, %c0_167, %c416], %186 {strides = array<i32>} : memref<2x8x512xf32, #tpu.memory_space<vmem>>, vector<1x8x32xf32>,
      %c0_168 = arith.constant 0 : index
      %c96_169 = arith.constant 96 : index
      %187 = vector.load %arg9[%c0_168, %c96_169] : memref<8x256xf32, #tpu.memory_space<vmem>>, vector<8x16xf32>
      %c0_170 = arith.constant 0 : index
      %c112_171 = arith.constant 112 : index
      %188 = vector.load %arg9[%c0_170, %c112_171] : memref<8x256xf32, #tpu.memory_space<vmem>>, vector<8x16xf32>
      %cst_172 = arith.constant 0.225806445 : f32
      %189 = vector.broadcast %cst_172 : f32 to vector<8x16xf32>
      %190 = arith.mulf %189, %187 : vector<8x16xf32>
      %cst_173 = arith.constant 0.774193525 : f32
      %191 = vector.broadcast %cst_173 : f32 to vector<8x16xf32>
      %192 = arith.mulf %191, %188 : vector<8x16xf32>
      %193 = arith.addf %190, %192 : vector<8x16xf32>
      %c0_174 = arith.constant 0 : index
      %c0_175 = arith.constant 0 : index
      %194 = vector.load %arg6[%c0_174, %c0_175] : memref<16x32xf32, #tpu.memory_space<vmem>>, vector<16x32xf32>
      %cst_176 = arith.constant dense<0.000000e+00> : vector<8x32xf32>
      %195 = tpu.matmul %193, %194, %cst_176 {dimension_numbers = #tpu.dot_dimension_numbers<[1], [0], [0], [1], [0, 0, 1, 1], [], []>} : vector<8x16xf32>, vector<16x32xf32>, vector<8x32xf32> -> vector<8x32xf32>
      %c0_177 = arith.constant 0 : index
      %c0_178 = arith.constant 0 : index
      %c448 = arith.constant 448 : index
      %196 = vector.load %arg10[%c0_177, %c0_178, %c448] : memref<2x8x512xf32, #tpu.memory_space<vmem>>, vector<1x8x32xf32>
      %197 = vector.shape_cast %196 : vector<1x8x32xf32> to vector<8x32xf32>
      %198 = vector.shape_cast %195 : vector<8x32xf32> to vector<1x8x32xf32>
      tpu.vector_store %arg10[%c0_177, %c0_178, %c448], %198 {strides = array<i32>} : memref<2x8x512xf32, #tpu.memory_space<vmem>>, vector<1x8x32xf32>,
      %c0_179 = arith.constant 0 : index
      %c112_180 = arith.constant 112 : index
      %199 = vector.load %arg9[%c0_179, %c112_180] : memref<8x256xf32, #tpu.memory_space<vmem>>, vector<8x16xf32>
      %c0_181 = arith.constant 0 : index
      %c128_182 = arith.constant 128 : index
      %200 = vector.load %arg9[%c0_181, %c128_182] : memref<8x256xf32, #tpu.memory_space<vmem>>, vector<8x16xf32>
      %cst_183 = arith.constant 0.741935492 : f32
      %201 = vector.broadcast %cst_183 : f32 to vector<8x16xf32>
      %202 = arith.mulf %201, %199 : vector<8x16xf32>
      %cst_184 = arith.constant 0.258064508 : f32
      %203 = vector.broadcast %cst_184 : f32 to vector<8x16xf32>
      %204 = arith.mulf %203, %200 : vector<8x16xf32>
      %205 = arith.addf %202, %204 : vector<8x16xf32>
      %c0_185 = arith.constant 0 : index
      %c0_186 = arith.constant 0 : index
      %206 = vector.load %arg6[%c0_185, %c0_186] : memref<16x32xf32, #tpu.memory_space<vmem>>, vector<16x32xf32>
      %cst_187 = arith.constant dense<0.000000e+00> : vector<8x32xf32>
      %207 = tpu.matmul %205, %206, %cst_187 {dimension_numbers = #tpu.dot_dimension_numbers<[1], [0], [0], [1], [0, 0, 1, 1], [], []>} : vector<8x16xf32>, vector<16x32xf32>, vector<8x32xf32> -> vector<8x32xf32>
      %c0_188 = arith.constant 0 : index
      %c0_189 = arith.constant 0 : index
      %c480 = arith.constant 480 : index
      %208 = vector.load %arg10[%c0_188, %c0_189, %c480] : memref<2x8x512xf32, #tpu.memory_space<vmem>>, vector<1x8x32xf32>
      %209 = vector.shape_cast %208 : vector<1x8x32xf32> to vector<8x32xf32>
      %210 = vector.shape_cast %207 : vector<8x32xf32> to vector<1x8x32xf32>
      tpu.vector_store %arg10[%c0_188, %c0_189, %c480], %210 {strides = array<i32>} : memref<2x8x512xf32, #tpu.memory_space<vmem>>, vector<1x8x32xf32>,
      %c0_190 = arith.constant 0 : index
      %c112_191 = arith.constant 112 : index
      %211 = vector.load %arg9[%c0_190, %c112_191] : memref<8x256xf32, #tpu.memory_space<vmem>>, vector<8x16xf32>
      %c0_192 = arith.constant 0 : index
      %c128_193 = arith.constant 128 : index
      %212 = vector.load %arg9[%c0_192, %c128_193] : memref<8x256xf32, #tpu.memory_space<vmem>>, vector<8x16xf32>
      %cst_194 = arith.constant 0.258064508 : f32
      %213 = vector.broadcast %cst_194 : f32 to vector<8x16xf32>
      %214 = arith.mulf %213, %211 : vector<8x16xf32>
      %cst_195 = arith.constant 0.741935492 : f32
      %215 = vector.broadcast %cst_195 : f32 to vector<8x16xf32>
      %216 = arith.mulf %215, %212 : vector<8x16xf32>
      %217 = arith.addf %214, %216 : vector<8x16xf32>
      %c0_196 = arith.constant 0 : index
      %c0_197 = arith.constant 0 : index
      %218 = vector.load %arg6[%c0_196, %c0_197] : memref<16x32xf32, #tpu.memory_space<vmem>>, vector<16x32xf32>
      %cst_198 = arith.constant dense<0.000000e+00> : vector<8x32xf32>
      %219 = tpu.matmul %217, %218, %cst_198 {dimension_numbers = #tpu.dot_dimension_numbers<[1], [0], [0], [1], [0, 0, 1, 1], [], []>} : vector<8x16xf32>, vector<16x32xf32>, vector<8x32xf32> -> vector<8x32xf32>
      %c1 = arith.constant 1 : index
      %c0_199 = arith.constant 0 : index
      %c0_200 = arith.constant 0 : index
      %220 = vector.load %arg10[%c1, %c0_199, %c0_200] : memref<2x8x512xf32, #tpu.memory_space<vmem>>, vector<1x8x32xf32>
      %221 = vector.shape_cast %220 : vector<1x8x32xf32> to vector<8x32xf32>
      %222 = vector.shape_cast %219 : vector<8x32xf32> to vector<1x8x32xf32>
      tpu.vector_store %arg10[%c1, %c0_199, %c0_200], %222 {strides = array<i32>} : memref<2x8x512xf32, #tpu.memory_space<vmem>>, vector<1x8x32xf32>,
      %c0_201 = arith.constant 0 : index
      %c128_202 = arith.constant 128 : index
      %223 = vector.load %arg9[%c0_201, %c128_202] : memref<8x256xf32, #tpu.memory_space<vmem>>, vector<8x16xf32>
      %c0_203 = arith.constant 0 : index
      %c144 = arith.constant 144 : index
      %224 = vector.load %arg9[%c0_203, %c144] : memref<8x256xf32, #tpu.memory_space<vmem>>, vector<8x16xf32>
      %cst_204 = arith.constant 0.774193525 : f32
      %225 = vector.broadcast %cst_204 : f32 to vector<8x16xf32>
      %226 = arith.mulf %225, %223 : vector<8x16xf32>
      %cst_205 = arith.constant 0.225806445 : f32
      %227 = vector.broadcast %cst_205 : f32 to vector<8x16xf32>
      %228 = arith.mulf %227, %224 : vector<8x16xf32>
      %229 = arith.addf %226, %228 : vector<8x16xf32>
      %c0_206 = arith.constant 0 : index
      %c0_207 = arith.constant 0 : index
      %230 = vector.load %arg6[%c0_206, %c0_207] : memref<16x32xf32, #tpu.memory_space<vmem>>, vector<16x32xf32>
      %cst_208 = arith.constant dense<0.000000e+00> : vector<8x32xf32>
      %231 = tpu.matmul %229, %230, %cst_208 {dimension_numbers = #tpu.dot_dimension_numbers<[1], [0], [0], [1], [0, 0, 1, 1], [], []>} : vector<8x16xf32>, vector<16x32xf32>, vector<8x32xf32> -> vector<8x32xf32>
      %c1_209 = arith.constant 1 : index
      %c0_210 = arith.constant 0 : index
      %c32_211 = arith.constant 32 : index
      %232 = vector.load %arg10[%c1_209, %c0_210, %c32_211] : memref<2x8x512xf32, #tpu.memory_space<vmem>>, vector<1x8x32xf32>
      %233 = vector.shape_cast %232 : vector<1x8x32xf32> to vector<8x32xf32>
      %234 = vector.shape_cast %231 : vector<8x32xf32> to vector<1x8x32xf32>
      tpu.vector_store %arg10[%c1_209, %c0_210, %c32_211], %234 {strides = array<i32>} : memref<2x8x512xf32, #tpu.memory_space<vmem>>, vector<1x8x32xf32>,
      %c0_212 = arith.constant 0 : index
      %c128_213 = arith.constant 128 : index
      %235 = vector.load %arg9[%c0_212, %c128_213] : memref<8x256xf32, #tpu.memory_space<vmem>>, vector<8x16xf32>
      %c0_214 = arith.constant 0 : index
      %c144_215 = arith.constant 144 : index
      %236 = vector.load %arg9[%c0_214, %c144_215] : memref<8x256xf32, #tpu.memory_space<vmem>>, vector<8x16xf32>
      %cst_216 = arith.constant 0.290322572 : f32
      %237 = vector.broadcast %cst_216 : f32 to vector<8x16xf32>
      %238 = arith.mulf %237, %235 : vector<8x16xf32>
      %cst_217 = arith.constant 0.709677398 : f32
      %239 = vector.broadcast %cst_217 : f32 to vector<8x16xf32>
      %240 = arith.mulf %239, %236 : vector<8x16xf32>
      %241 = arith.addf %238, %240 : vector<8x16xf32>
      %c0_218 = arith.constant 0 : index
      %c0_219 = arith.constant 0 : index
      %242 = vector.load %arg6[%c0_218, %c0_219] : memref<16x32xf32, #tpu.memory_space<vmem>>, vector<16x32xf32>
      %cst_220 = arith.constant dense<0.000000e+00> : vector<8x32xf32>
      %243 = tpu.matmul %241, %242, %cst_220 {dimension_numbers = #tpu.dot_dimension_numbers<[1], [0], [0], [1], [0, 0, 1, 1], [], []>} : vector<8x16xf32>, vector<16x32xf32>, vector<8x32xf32> -> vector<8x32xf32>
      %c1_221 = arith.constant 1 : index
      %c0_222 = arith.constant 0 : index
      %c64_223 = arith.constant 64 : index
      %244 = vector.load %arg10[%c1_221, %c0_222, %c64_223] : memref<2x8x512xf32, #tpu.memory_space<vmem>>, vector<1x8x32xf32>
      %245 = vector.shape_cast %244 : vector<1x8x32xf32> to vector<8x32xf32>
      %246 = vector.shape_cast %243 : vector<8x32xf32> to vector<1x8x32xf32>
      tpu.vector_store %arg10[%c1_221, %c0_222, %c64_223], %246 {strides = array<i32>} : memref<2x8x512xf32, #tpu.memory_space<vmem>>, vector<1x8x32xf32>,
      %c0_224 = arith.constant 0 : index
      %c144_225 = arith.constant 144 : index
      %247 = vector.load %arg9[%c0_224, %c144_225] : memref<8x256xf32, #tpu.memory_space<vmem>>, vector<8x16xf32>
      %c0_226 = arith.constant 0 : index
      %c160_227 = arith.constant 160 : index
      %248 = vector.load %arg9[%c0_226, %c160_227] : memref<8x256xf32, #tpu.memory_space<vmem>>, vector<8x16xf32>
      %cst_228 = arith.constant 0.806451618 : f32
      %249 = vector.broadcast %cst_228 : f32 to vector<8x16xf32>
      %250 = arith.mulf %249, %247 : vector<8x16xf32>
      %cst_229 = arith.constant 0.193548381 : f32
      %251 = vector.broadcast %cst_229 : f32 to vector<8x16xf32>
      %252 = arith.mulf %251, %248 : vector<8x16xf32>
      %253 = arith.addf %250, %252 : vector<8x16xf32>
      %c0_230 = arith.constant 0 : index
      %c0_231 = arith.constant 0 : index
      %254 = vector.load %arg6[%c0_230, %c0_231] : memref<16x32xf32, #tpu.memory_space<vmem>>, vector<16x32xf32>
      %cst_232 = arith.constant dense<0.000000e+00> : vector<8x32xf32>
      %255 = tpu.matmul %253, %254, %cst_232 {dimension_numbers = #tpu.dot_dimension_numbers<[1], [0], [0], [1], [0, 0, 1, 1], [], []>} : vector<8x16xf32>, vector<16x32xf32>, vector<8x32xf32> -> vector<8x32xf32>
      %c1_233 = arith.constant 1 : index
      %c0_234 = arith.constant 0 : index
      %c96_235 = arith.constant 96 : index
      %256 = vector.load %arg10[%c1_233, %c0_234, %c96_235] : memref<2x8x512xf32, #tpu.memory_space<vmem>>, vector<1x8x32xf32>
      %257 = vector.shape_cast %256 : vector<1x8x32xf32> to vector<8x32xf32>
      %258 = vector.shape_cast %255 : vector<8x32xf32> to vector<1x8x32xf32>
      tpu.vector_store %arg10[%c1_233, %c0_234, %c96_235], %258 {strides = array<i32>} : memref<2x8x512xf32, #tpu.memory_space<vmem>>, vector<1x8x32xf32>,
      %c0_236 = arith.constant 0 : index
      %c144_237 = arith.constant 144 : index
      %259 = vector.load %arg9[%c0_236, %c144_237] : memref<8x256xf32, #tpu.memory_space<vmem>>, vector<8x16xf32>
      %c0_238 = arith.constant 0 : index
      %c160_239 = arith.constant 160 : index
      %260 = vector.load %arg9[%c0_238, %c160_239] : memref<8x256xf32, #tpu.memory_space<vmem>>, vector<8x16xf32>
      %cst_240 = arith.constant 0.322580636 : f32
      %261 = vector.broadcast %cst_240 : f32 to vector<8x16xf32>
      %262 = arith.mulf %261, %259 : vector<8x16xf32>
      %cst_241 = arith.constant 0.677419364 : f32
      %263 = vector.broadcast %cst_241 : f32 to vector<8x16xf32>
      %264 = arith.mulf %263, %260 : vector<8x16xf32>
      %265 = arith.addf %262, %264 : vector<8x16xf32>
      %c0_242 = arith.constant 0 : index
      %c0_243 = arith.constant 0 : index
      %266 = vector.load %arg6[%c0_242, %c0_243] : memref<16x32xf32, #tpu.memory_space<vmem>>, vector<16x32xf32>
      %cst_244 = arith.constant dense<0.000000e+00> : vector<8x32xf32>
      %267 = tpu.matmul %265, %266, %cst_244 {dimension_numbers = #tpu.dot_dimension_numbers<[1], [0], [0], [1], [0, 0, 1, 1], [], []>} : vector<8x16xf32>, vector<16x32xf32>, vector<8x32xf32> -> vector<8x32xf32>
      %c1_245 = arith.constant 1 : index
      %c0_246 = arith.constant 0 : index
      %c128_247 = arith.constant 128 : index
      %268 = vector.load %arg10[%c1_245, %c0_246, %c128_247] : memref<2x8x512xf32, #tpu.memory_space<vmem>>, vector<1x8x32xf32>
      %269 = vector.shape_cast %268 : vector<1x8x32xf32> to vector<8x32xf32>
      %270 = vector.shape_cast %267 : vector<8x32xf32> to vector<1x8x32xf32>
      tpu.vector_store %arg10[%c1_245, %c0_246, %c128_247], %270 {strides = array<i32>} : memref<2x8x512xf32, #tpu.memory_space<vmem>>, vector<1x8x32xf32>,
      %c0_248 = arith.constant 0 : index
      %c160_249 = arith.constant 160 : index
      %271 = vector.load %arg9[%c0_248, %c160_249] : memref<8x256xf32, #tpu.memory_space<vmem>>, vector<8x16xf32>
      %c0_250 = arith.constant 0 : index
      %c176 = arith.constant 176 : index
      %272 = vector.load %arg9[%c0_250, %c176] : memref<8x256xf32, #tpu.memory_space<vmem>>, vector<8x16xf32>
      %cst_251 = arith.constant 0.838709652 : f32
      %273 = vector.broadcast %cst_251 : f32 to vector<8x16xf32>
      %274 = arith.mulf %273, %271 : vector<8x16xf32>
      %cst_252 = arith.constant 0.161290318 : f32
      %275 = vector.broadcast %cst_252 : f32 to vector<8x16xf32>
      %276 = arith.mulf %275, %272 : vector<8x16xf32>
      %277 = arith.addf %274, %276 : vector<8x16xf32>
      %c0_253 = arith.constant 0 : index
      %c0_254 = arith.constant 0 : index
      %278 = vector.load %arg6[%c0_253, %c0_254] : memref<16x32xf32, #tpu.memory_space<vmem>>, vector<16x32xf32>
      %cst_255 = arith.constant dense<0.000000e+00> : vector<8x32xf32>
      %279 = tpu.matmul %277, %278, %cst_255 {dimension_numbers = #tpu.dot_dimension_numbers<[1], [0], [0], [1], [0, 0, 1, 1], [], []>} : vector<8x16xf32>, vector<16x32xf32>, vector<8x32xf32> -> vector<8x32xf32>
      %c1_256 = arith.constant 1 : index
      %c0_257 = arith.constant 0 : index
      %c160_258 = arith.constant 160 : index
      %280 = vector.load %arg10[%c1_256, %c0_257, %c160_258] : memref<2x8x512xf32, #tpu.memory_space<vmem>>, vector<1x8x32xf32>
      %281 = vector.shape_cast %280 : vector<1x8x32xf32> to vector<8x32xf32>
      %282 = vector.shape_cast %279 : vector<8x32xf32> to vector<1x8x32xf32>
      tpu.vector_store %arg10[%c1_256, %c0_257, %c160_258], %282 {strides = array<i32>} : memref<2x8x512xf32, #tpu.memory_space<vmem>>, vector<1x8x32xf32>,
      %c0_259 = arith.constant 0 : index
      %c160_260 = arith.constant 160 : index
      %283 = vector.load %arg9[%c0_259, %c160_260] : memref<8x256xf32, #tpu.memory_space<vmem>>, vector<8x16xf32>
      %c0_261 = arith.constant 0 : index
      %c176_262 = arith.constant 176 : index
      %284 = vector.load %arg9[%c0_261, %c176_262] : memref<8x256xf32, #tpu.memory_space<vmem>>, vector<8x16xf32>
      %cst_263 = arith.constant 0.354838699 : f32
      %285 = vector.broadcast %cst_263 : f32 to vector<8x16xf32>
      %286 = arith.mulf %285, %283 : vector<8x16xf32>
      %cst_264 = arith.constant 0.645161271 : f32
      %287 = vector.broadcast %cst_264 : f32 to vector<8x16xf32>
      %288 = arith.mulf %287, %284 : vector<8x16xf32>
      %289 = arith.addf %286, %288 : vector<8x16xf32>
      %c0_265 = arith.constant 0 : index
      %c0_266 = arith.constant 0 : index
      %290 = vector.load %arg6[%c0_265, %c0_266] : memref<16x32xf32, #tpu.memory_space<vmem>>, vector<16x32xf32>
      %cst_267 = arith.constant dense<0.000000e+00> : vector<8x32xf32>
      %291 = tpu.matmul %289, %290, %cst_267 {dimension_numbers = #tpu.dot_dimension_numbers<[1], [0], [0], [1], [0, 0, 1, 1], [], []>} : vector<8x16xf32>, vector<16x32xf32>, vector<8x32xf32> -> vector<8x32xf32>
      %c1_268 = arith.constant 1 : index
      %c0_269 = arith.constant 0 : index
      %c192_270 = arith.constant 192 : index
      %292 = vector.load %arg10[%c1_268, %c0_269, %c192_270] : memref<2x8x512xf32, #tpu.memory_space<vmem>>, vector<1x8x32xf32>
      %293 = vector.shape_cast %292 : vector<1x8x32xf32> to vector<8x32xf32>
      %294 = vector.shape_cast %291 : vector<8x32xf32> to vector<1x8x32xf32>
      tpu.vector_store %arg10[%c1_268, %c0_269, %c192_270], %294 {strides = array<i32>} : memref<2x8x512xf32, #tpu.memory_space<vmem>>, vector<1x8x32xf32>,
      %c0_271 = arith.constant 0 : index
      %c176_272 = arith.constant 176 : index
      %295 = vector.load %arg9[%c0_271, %c176_272] : memref<8x256xf32, #tpu.memory_space<vmem>>, vector<8x16xf32>
      %c0_273 = arith.constant 0 : index
      %c192_274 = arith.constant 192 : index
      %296 = vector.load %arg9[%c0_273, %c192_274] : memref<8x256xf32, #tpu.memory_space<vmem>>, vector<8x16xf32>
      %cst_275 = arith.constant 0.870967745 : f32
      %297 = vector.broadcast %cst_275 : f32 to vector<8x16xf32>
      %298 = arith.mulf %297, %295 : vector<8x16xf32>
      %cst_276 = arith.constant 0.129032254 : f32
      %299 = vector.broadcast %cst_276 : f32 to vector<8x16xf32>
      %300 = arith.mulf %299, %296 : vector<8x16xf32>
      %301 = arith.addf %298, %300 : vector<8x16xf32>
      %c0_277 = arith.constant 0 : index
      %c0_278 = arith.constant 0 : index
      %302 = vector.load %arg6[%c0_277, %c0_278] : memref<16x32xf32, #tpu.memory_space<vmem>>, vector<16x32xf32>
      %cst_279 = arith.constant dense<0.000000e+00> : vector<8x32xf32>
      %303 = tpu.matmul %301, %302, %cst_279 {dimension_numbers = #tpu.dot_dimension_numbers<[1], [0], [0], [1], [0, 0, 1, 1], [], []>} : vector<8x16xf32>, vector<16x32xf32>, vector<8x32xf32> -> vector<8x32xf32>
      %c1_280 = arith.constant 1 : index
      %c0_281 = arith.constant 0 : index
      %c224_282 = arith.constant 224 : index
      %304 = vector.load %arg10[%c1_280, %c0_281, %c224_282] : memref<2x8x512xf32, #tpu.memory_space<vmem>>, vector<1x8x32xf32>
      %305 = vector.shape_cast %304 : vector<1x8x32xf32> to vector<8x32xf32>
      %306 = vector.shape_cast %303 : vector<8x32xf32> to vector<1x8x32xf32>
      tpu.vector_store %arg10[%c1_280, %c0_281, %c224_282], %306 {strides = array<i32>} : memref<2x8x512xf32, #tpu.memory_space<vmem>>, vector<1x8x32xf32>,
      %c0_283 = arith.constant 0 : index
      %c176_284 = arith.constant 176 : index
      %307 = vector.load %arg9[%c0_283, %c176_284] : memref<8x256xf32, #tpu.memory_space<vmem>>, vector<8x16xf32>
      %c0_285 = arith.constant 0 : index
      %c192_286 = arith.constant 192 : index
      %308 = vector.load %arg9[%c0_285, %c192_286] : memref<8x256xf32, #tpu.memory_space<vmem>>, vector<8x16xf32>
      %cst_287 = arith.constant 0.387096763 : f32
      %309 = vector.broadcast %cst_287 : f32 to vector<8x16xf32>
      %310 = arith.mulf %309, %307 : vector<8x16xf32>
      %cst_288 = arith.constant 0.612903237 : f32
      %311 = vector.broadcast %cst_288 : f32 to vector<8x16xf32>
      %312 = arith.mulf %311, %308 : vector<8x16xf32>
      %313 = arith.addf %310, %312 : vector<8x16xf32>
      %c0_289 = arith.constant 0 : index
      %c0_290 = arith.constant 0 : index
      %314 = vector.load %arg6[%c0_289, %c0_290] : memref<16x32xf32, #tpu.memory_space<vmem>>, vector<16x32xf32>
      %cst_291 = arith.constant dense<0.000000e+00> : vector<8x32xf32>
      %315 = tpu.matmul %313, %314, %cst_291 {dimension_numbers = #tpu.dot_dimension_numbers<[1], [0], [0], [1], [0, 0, 1, 1], [], []>} : vector<8x16xf32>, vector<16x32xf32>, vector<8x32xf32> -> vector<8x32xf32>
      %c1_292 = arith.constant 1 : index
      %c0_293 = arith.constant 0 : index
      %c256_294 = arith.constant 256 : index
      %316 = vector.load %arg10[%c1_292, %c0_293, %c256_294] : memref<2x8x512xf32, #tpu.memory_space<vmem>>, vector<1x8x32xf32>
      %317 = vector.shape_cast %316 : vector<1x8x32xf32> to vector<8x32xf32>
      %318 = vector.shape_cast %315 : vector<8x32xf32> to vector<1x8x32xf32>
      tpu.vector_store %arg10[%c1_292, %c0_293, %c256_294], %318 {strides = array<i32>} : memref<2x8x512xf32, #tpu.memory_space<vmem>>, vector<1x8x32xf32>,
      %c0_295 = arith.constant 0 : index
      %c192_296 = arith.constant 192 : index
      %319 = vector.load %arg9[%c0_295, %c192_296] : memref<8x256xf32, #tpu.memory_space<vmem>>, vector<8x16xf32>
      %c0_297 = arith.constant 0 : index
      %c208 = arith.constant 208 : index
      %320 = vector.load %arg9[%c0_297, %c208] : memref<8x256xf32, #tpu.memory_space<vmem>>, vector<8x16xf32>
      %cst_298 = arith.constant 0.903225779 : f32
      %321 = vector.broadcast %cst_298 : f32 to vector<8x16xf32>
      %322 = arith.mulf %321, %319 : vector<8x16xf32>
      %cst_299 = arith.constant 0.0967741906 : f32
      %323 = vector.broadcast %cst_299 : f32 to vector<8x16xf32>
      %324 = arith.mulf %323, %320 : vector<8x16xf32>
      %325 = arith.addf %322, %324 : vector<8x16xf32>
      %c0_300 = arith.constant 0 : index
      %c0_301 = arith.constant 0 : index
      %326 = vector.load %arg6[%c0_300, %c0_301] : memref<16x32xf32, #tpu.memory_space<vmem>>, vector<16x32xf32>
      %cst_302 = arith.constant dense<0.000000e+00> : vector<8x32xf32>
      %327 = tpu.matmul %325, %326, %cst_302 {dimension_numbers = #tpu.dot_dimension_numbers<[1], [0], [0], [1], [0, 0, 1, 1], [], []>} : vector<8x16xf32>, vector<16x32xf32>, vector<8x32xf32> -> vector<8x32xf32>
      %c1_303 = arith.constant 1 : index
      %c0_304 = arith.constant 0 : index
      %c288_305 = arith.constant 288 : index
      %328 = vector.load %arg10[%c1_303, %c0_304, %c288_305] : memref<2x8x512xf32, #tpu.memory_space<vmem>>, vector<1x8x32xf32>
      %329 = vector.shape_cast %328 : vector<1x8x32xf32> to vector<8x32xf32>
      %330 = vector.shape_cast %327 : vector<8x32xf32> to vector<1x8x32xf32>
      tpu.vector_store %arg10[%c1_303, %c0_304, %c288_305], %330 {strides = array<i32>} : memref<2x8x512xf32, #tpu.memory_space<vmem>>, vector<1x8x32xf32>,
      %c0_306 = arith.constant 0 : index
      %c192_307 = arith.constant 192 : index
      %331 = vector.load %arg9[%c0_306, %c192_307] : memref<8x256xf32, #tpu.memory_space<vmem>>, vector<8x16xf32>
      %c0_308 = arith.constant 0 : index
      %c208_309 = arith.constant 208 : index
      %332 = vector.load %arg9[%c0_308, %c208_309] : memref<8x256xf32, #tpu.memory_space<vmem>>, vector<8x16xf32>
      %cst_310 = arith.constant 0.419354826 : f32
      %333 = vector.broadcast %cst_310 : f32 to vector<8x16xf32>
      %334 = arith.mulf %333, %331 : vector<8x16xf32>
      %cst_311 = arith.constant 0.580645144 : f32
      %335 = vector.broadcast %cst_311 : f32 to vector<8x16xf32>
      %336 = arith.mulf %335, %332 : vector<8x16xf32>
      %337 = arith.addf %334, %336 : vector<8x16xf32>
      %c0_312 = arith.constant 0 : index
      %c0_313 = arith.constant 0 : index
      %338 = vector.load %arg6[%c0_312, %c0_313] : memref<16x32xf32, #tpu.memory_space<vmem>>, vector<16x32xf32>
      %cst_314 = arith.constant dense<0.000000e+00> : vector<8x32xf32>
      %339 = tpu.matmul %337, %338, %cst_314 {dimension_numbers = #tpu.dot_dimension_numbers<[1], [0], [0], [1], [0, 0, 1, 1], [], []>} : vector<8x16xf32>, vector<16x32xf32>, vector<8x32xf32> -> vector<8x32xf32>
      %c1_315 = arith.constant 1 : index
      %c0_316 = arith.constant 0 : index
      %c320_317 = arith.constant 320 : index
      %340 = vector.load %arg10[%c1_315, %c0_316, %c320_317] : memref<2x8x512xf32, #tpu.memory_space<vmem>>, vector<1x8x32xf32>
      %341 = vector.shape_cast %340 : vector<1x8x32xf32> to vector<8x32xf32>
      %342 = vector.shape_cast %339 : vector<8x32xf32> to vector<1x8x32xf32>
      tpu.vector_store %arg10[%c1_315, %c0_316, %c320_317], %342 {strides = array<i32>} : memref<2x8x512xf32, #tpu.memory_space<vmem>>, vector<1x8x32xf32>,
      %c0_318 = arith.constant 0 : index
      %c208_319 = arith.constant 208 : index
      %343 = vector.load %arg9[%c0_318, %c208_319] : memref<8x256xf32, #tpu.memory_space<vmem>>, vector<8x16xf32>
      %c0_320 = arith.constant 0 : index
      %c224_321 = arith.constant 224 : index
      %344 = vector.load %arg9[%c0_320, %c224_321] : memref<8x256xf32, #tpu.memory_space<vmem>>, vector<8x16xf32>
      %cst_322 = arith.constant 0.935483872 : f32
      %345 = vector.broadcast %cst_322 : f32 to vector<8x16xf32>
      %346 = arith.mulf %345, %343 : vector<8x16xf32>
      %cst_323 = arith.constant 0.0645161271 : f32
      %347 = vector.broadcast %cst_323 : f32 to vector<8x16xf32>
      %348 = arith.mulf %347, %344 : vector<8x16xf32>
      %349 = arith.addf %346, %348 : vector<8x16xf32>
      %c0_324 = arith.constant 0 : index
      %c0_325 = arith.constant 0 : index
      %350 = vector.load %arg6[%c0_324, %c0_325] : memref<16x32xf32, #tpu.memory_space<vmem>>, vector<16x32xf32>
      %cst_326 = arith.constant dense<0.000000e+00> : vector<8x32xf32>
      %351 = tpu.matmul %349, %350, %cst_326 {dimension_numbers = #tpu.dot_dimension_numbers<[1], [0], [0], [1], [0, 0, 1, 1], [], []>} : vector<8x16xf32>, vector<16x32xf32>, vector<8x32xf32> -> vector<8x32xf32>
      %c1_327 = arith.constant 1 : index
      %c0_328 = arith.constant 0 : index
      %c352_329 = arith.constant 352 : index
      %352 = vector.load %arg10[%c1_327, %c0_328, %c352_329] : memref<2x8x512xf32, #tpu.memory_space<vmem>>, vector<1x8x32xf32>
      %353 = vector.shape_cast %352 : vector<1x8x32xf32> to vector<8x32xf32>
      %354 = vector.shape_cast %351 : vector<8x32xf32> to vector<1x8x32xf32>
      tpu.vector_store %arg10[%c1_327, %c0_328, %c352_329], %354 {strides = array<i32>} : memref<2x8x512xf32, #tpu.memory_space<vmem>>, vector<1x8x32xf32>,
      %c0_330 = arith.constant 0 : index
      %c208_331 = arith.constant 208 : index
      %355 = vector.load %arg9[%c0_330, %c208_331] : memref<8x256xf32, #tpu.memory_space<vmem>>, vector<8x16xf32>
      %c0_332 = arith.constant 0 : index
      %c224_333 = arith.constant 224 : index
      %356 = vector.load %arg9[%c0_332, %c224_333] : memref<8x256xf32, #tpu.memory_space<vmem>>, vector<8x16xf32>
      %cst_334 = arith.constant 0.45161289 : f32
      %357 = vector.broadcast %cst_334 : f32 to vector<8x16xf32>
      %358 = arith.mulf %357, %355 : vector<8x16xf32>
      %cst_335 = arith.constant 0.54838711 : f32
      %359 = vector.broadcast %cst_335 : f32 to vector<8x16xf32>
      %360 = arith.mulf %359, %356 : vector<8x16xf32>
      %361 = arith.addf %358, %360 : vector<8x16xf32>
      %c0_336 = arith.constant 0 : index
      %c0_337 = arith.constant 0 : index
      %362 = vector.load %arg6[%c0_336, %c0_337] : memref<16x32xf32, #tpu.memory_space<vmem>>, vector<16x32xf32>
      %cst_338 = arith.constant dense<0.000000e+00> : vector<8x32xf32>
      %363 = tpu.matmul %361, %362, %cst_338 {dimension_numbers = #tpu.dot_dimension_numbers<[1], [0], [0], [1], [0, 0, 1, 1], [], []>} : vector<8x16xf32>, vector<16x32xf32>, vector<8x32xf32> -> vector<8x32xf32>
      %c1_339 = arith.constant 1 : index
      %c0_340 = arith.constant 0 : index
      %c384_341 = arith.constant 384 : index
      %364 = vector.load %arg10[%c1_339, %c0_340, %c384_341] : memref<2x8x512xf32, #tpu.memory_space<vmem>>, vector<1x8x32xf32>
      %365 = vector.shape_cast %364 : vector<1x8x32xf32> to vector<8x32xf32>
      %366 = vector.shape_cast %363 : vector<8x32xf32> to vector<1x8x32xf32>
      tpu.vector_store %arg10[%c1_339, %c0_340, %c384_341], %366 {strides = array<i32>} : memref<2x8x512xf32, #tpu.memory_space<vmem>>, vector<1x8x32xf32>,
      %c0_342 = arith.constant 0 : index
      %c224_343 = arith.constant 224 : index
      %367 = vector.load %arg9[%c0_342, %c224_343] : memref<8x256xf32, #tpu.memory_space<vmem>>, vector<8x16xf32>
      %c0_344 = arith.constant 0 : index
      %c240 = arith.constant 240 : index
      %368 = vector.load %arg9[%c0_344, %c240] : memref<8x256xf32, #tpu.memory_space<vmem>>, vector<8x16xf32>
      %cst_345 = arith.constant 0.967741906 : f32
      %369 = vector.broadcast %cst_345 : f32 to vector<8x16xf32>
      %370 = arith.mulf %369, %367 : vector<8x16xf32>
      %cst_346 = arith.constant 0.0322580636 : f32
      %371 = vector.broadcast %cst_346 : f32 to vector<8x16xf32>
      %372 = arith.mulf %371, %368 : vector<8x16xf32>
      %373 = arith.addf %370, %372 : vector<8x16xf32>
      %c0_347 = arith.constant 0 : index
      %c0_348 = arith.constant 0 : index
      %374 = vector.load %arg6[%c0_347, %c0_348] : memref<16x32xf32, #tpu.memory_space<vmem>>, vector<16x32xf32>
      %cst_349 = arith.constant dense<0.000000e+00> : vector<8x32xf32>
      %375 = tpu.matmul %373, %374, %cst_349 {dimension_numbers = #tpu.dot_dimension_numbers<[1], [0], [0], [1], [0, 0, 1, 1], [], []>} : vector<8x16xf32>, vector<16x32xf32>, vector<8x32xf32> -> vector<8x32xf32>
      %c1_350 = arith.constant 1 : index
      %c0_351 = arith.constant 0 : index
      %c416_352 = arith.constant 416 : index
      %376 = vector.load %arg10[%c1_350, %c0_351, %c416_352] : memref<2x8x512xf32, #tpu.memory_space<vmem>>, vector<1x8x32xf32>
      %377 = vector.shape_cast %376 : vector<1x8x32xf32> to vector<8x32xf32>
      %378 = vector.shape_cast %375 : vector<8x32xf32> to vector<1x8x32xf32>
      tpu.vector_store %arg10[%c1_350, %c0_351, %c416_352], %378 {strides = array<i32>} : memref<2x8x512xf32, #tpu.memory_space<vmem>>, vector<1x8x32xf32>,
      %c0_353 = arith.constant 0 : index
      %c224_354 = arith.constant 224 : index
      %379 = vector.load %arg9[%c0_353, %c224_354] : memref<8x256xf32, #tpu.memory_space<vmem>>, vector<8x16xf32>
      %c0_355 = arith.constant 0 : index
      %c240_356 = arith.constant 240 : index
      %380 = vector.load %arg9[%c0_355, %c240_356] : memref<8x256xf32, #tpu.memory_space<vmem>>, vector<8x16xf32>
      %cst_357 = arith.constant 0.483870953 : f32
      %381 = vector.broadcast %cst_357 : f32 to vector<8x16xf32>
      %382 = arith.mulf %381, %379 : vector<8x16xf32>
      %cst_358 = arith.constant 5.161290e-01 : f32
      %383 = vector.broadcast %cst_358 : f32 to vector<8x16xf32>
      %384 = arith.mulf %383, %380 : vector<8x16xf32>
      %385 = arith.addf %382, %384 : vector<8x16xf32>
      %c0_359 = arith.constant 0 : index
      %c0_360 = arith.constant 0 : index
      %386 = vector.load %arg6[%c0_359, %c0_360] : memref<16x32xf32, #tpu.memory_space<vmem>>, vector<16x32xf32>
      %cst_361 = arith.constant dense<0.000000e+00> : vector<8x32xf32>
      %387 = tpu.matmul %385, %386, %cst_361 {dimension_numbers = #tpu.dot_dimension_numbers<[1], [0], [0], [1], [0, 0, 1, 1], [], []>} : vector<8x16xf32>, vector<16x32xf32>, vector<8x32xf32> -> vector<8x32xf32>
      %c1_362 = arith.constant 1 : index
      %c0_363 = arith.constant 0 : index
      %c448_364 = arith.constant 448 : index
      %388 = vector.load %arg10[%c1_362, %c0_363, %c448_364] : memref<2x8x512xf32, #tpu.memory_space<vmem>>, vector<1x8x32xf32>
      %389 = vector.shape_cast %388 : vector<1x8x32xf32> to vector<8x32xf32>
      %390 = vector.shape_cast %387 : vector<8x32xf32> to vector<1x8x32xf32>
      tpu.vector_store %arg10[%c1_362, %c0_363, %c448_364], %390 {strides = array<i32>} : memref<2x8x512xf32, #tpu.memory_space<vmem>>, vector<1x8x32xf32>,
      %c0_365 = arith.constant 0 : index
      %c240_366 = arith.constant 240 : index
      %391 = vector.load %arg9[%c0_365, %c240_366] : memref<8x256xf32, #tpu.memory_space<vmem>>, vector<8x16xf32>
      %c0_367 = arith.constant 0 : index
      %c0_368 = arith.constant 0 : index
      %392 = vector.load %arg6[%c0_367, %c0_368] : memref<16x32xf32, #tpu.memory_space<vmem>>, vector<16x32xf32>
      %cst_369 = arith.constant dense<0.000000e+00> : vector<8x32xf32>
      %393 = tpu.matmul %391, %392, %cst_369 {dimension_numbers = #tpu.dot_dimension_numbers<[1], [0], [0], [1], [0, 0, 1, 1], [], []>} : vector<8x16xf32>, vector<16x32xf32>, vector<8x32xf32> -> vector<8x32xf32>
      %c1_370 = arith.constant 1 : index
      %c0_371 = arith.constant 0 : index
      %c480_372 = arith.constant 480 : index
      %394 = vector.load %arg10[%c1_370, %c0_371, %c480_372] : memref<2x8x512xf32, #tpu.memory_space<vmem>>, vector<1x8x32xf32>
      %395 = vector.shape_cast %394 : vector<1x8x32xf32> to vector<8x32xf32>
      %396 = vector.shape_cast %393 : vector<8x32xf32> to vector<1x8x32xf32>
      tpu.vector_store %arg10[%c1_370, %c0_371, %c480_372], %396 {strides = array<i32>} : memref<2x8x512xf32, #tpu.memory_space<vmem>>, vector<1x8x32xf32>,
    } else {
    }
    %c0 = arith.constant 0 : index
    %c0_1 = arith.constant 0 : index
    %3 = vector.load %arg5[%c0, %c0_1] : memref<8x4xbf16, #tpu.memory_space<vmem>>, vector<8x4xbf16>
    %c0_2 = arith.constant 0 : index
    %c0_3 = arith.constant 0 : index
    %c0_4 = arith.constant 0 : index
    %4 = vector.load %arg3[%c0_2, %c0_3, %c0_4] : memref<1x4x512xbf16, #tpu.memory_space<vmem>>, vector<1x4x512xbf16>
    %5 = vector.shape_cast %4 : vector<1x4x512xbf16> to vector<4x512xbf16>
    %cst = arith.constant dense<0.000000e+00> : vector<8x512xf32>
    %6 = tpu.matmul %3, %5, %cst {dimension_numbers = #tpu.dot_dimension_numbers<[1], [0], [0], [1], [0, 0, 1, 1], [], []>} : vector<8x4xbf16>, vector<4x512xbf16>, vector<8x512xf32> -> vector<8x512xf32>
    %7 = arith.index_cast %arg1 : i32 to index
    %c0_5 = arith.constant 0 : index
    %c0_6 = arith.constant 0 : index
    %8 = vector.load %arg10[%7, %c0_5, %c0_6] : memref<2x8x512xf32, #tpu.memory_space<vmem>>, vector<1x8x512xf32>
    %9 = vector.shape_cast %8 : vector<1x8x512xf32> to vector<8x512xf32>
    %10 = arith.addf %6, %9 : vector<8x512xf32>
    %c0_7 = arith.constant 0 : index
    %c0_8 = arith.constant 0 : index
    %11 = vector.load %arg7[%c0_7, %c0_8] : memref<8x1xf32, #tpu.memory_space<vmem>>, vector<8x1xf32>
    %12 = vector.broadcast %11 : vector<8x1xf32> to vector<8x512xf32>
    %13 = arith.addf %10, %12 : vector<8x512xf32>
    %cst_9 = arith.constant 0.000000e+00 : f32
    %14 = vector.broadcast %cst_9 : f32 to vector<8x512xf32>
    %15 = arith.maximumf %13, %14 : vector<8x512xf32>
    %16 = arith.truncf %15 : vector<8x512xf32> to vector<8x512xbf16>
    %c0_10 = arith.constant 0 : index
    %c0_11 = arith.constant 0 : index
    %c0_12 = arith.constant 0 : index
    %17 = vector.load %arg8[%c0_10, %c0_11, %c0_12] : memref<1x8x512xbf16, #tpu.memory_space<vmem>>, vector<1x8x512xbf16>
    %18 = vector.shape_cast %17 : vector<1x8x512xbf16> to vector<8x512xbf16>
    %19 = vector.shape_cast %16 : vector<8x512xbf16> to vector<1x8x512xbf16>
    tpu.vector_store %arg8[%c0_10, %c0_11, %c0_12], %19 {strides = array<i32>} : memref<1x8x512xbf16, #tpu.memory_space<vmem>>, vector<1x8x512xbf16>,
    return
  }
  func.func @transform_0(%arg0: i32, %arg1: i32) -> (i32, i32, i32) {
    %c0_i32 = arith.constant 0 : i32
    %c0_i32_0 = arith.constant 0 : i32
    %c0_i32_1 = arith.constant 0 : i32
    return %arg0, %c0_i32, %c0_i32_0 : i32, i32, i32
  }
  func.func @transform_1(%arg0: i32, %arg1: i32) -> (i32, i32, i32) {
    %c0_i32 = arith.constant 0 : i32
    %c0_i32_0 = arith.constant 0 : i32
    return %arg0, %c0_i32, %arg1 : i32, i32, i32
  }
  func.func @transform_2(%arg0: i32, %arg1: i32) -> (i32, i32) {
    %c0_i32 = arith.constant 0 : i32
    %c0_i32_0 = arith.constant 0 : i32
    %c0_i32_1 = arith.constant 0 : i32
    return %c0_i32, %c0_i32_0 : i32, i32
  }
  func.func @transform_3(%arg0: i32, %arg1: i32) -> (i32, i32) {
    %c0_i32 = arith.constant 0 : i32
    %c0_i32_0 = arith.constant 0 : i32
    %c0_i32_1 = arith.constant 0 : i32
    return %c0_i32, %c0_i32_0 : i32, i32
  }
  func.func @transform_4(%arg0: i32, %arg1: i32) -> (i32, i32) {
    %c0_i32 = arith.constant 0 : i32
    %c0_i32_0 = arith.constant 0 : i32
    %c0_i32_1 = arith.constant 0 : i32
    return %c0_i32, %c0_i32_0 : i32, i32
  }
  func.func @transform_5(%arg0: i32, %arg1: i32) -> (i32, i32) {
    %c0_i32 = arith.constant 0 : i32
    %c0_i32_0 = arith.constant 0 : i32
    %c0_i32_1 = arith.constant 0 : i32
    return %c0_i32, %c0_i32_0 : i32, i32
  }
  func.func @transform_6(%arg0: i32, %arg1: i32) -> (i32, i32, i32) {
    %c0_i32 = arith.constant 0 : i32
    %c0_i32_0 = arith.constant 0 : i32
    return %arg0, %c0_i32, %arg1 : i32, i32, i32
  }
}

</mosaic_0001>

<bundles_post_ra>
// kernel: tpu_custom_call.1
= control target key start
LH: loop header
LB: loop body
LE: loop exit
PB: predicated region body
PF: predicated region fallthrough
CT: control target
= control target key end

     0   :  { %11 = vsyncpa [#allocation5], 0  ;;  %s4740_s0 = inlined_call_operand.vmem [shape: bf16[2,4,256], index: 0, kind: input, shape index: {}]   ;;  %s4741_s1 = inlined_call_operand.hbm [shape: bf16[2,4,1024], index: 1, kind: input, shape index: {}]   ;;  %s4742_s2 = inlined_call_operand.vmem [shape: bf16[8,4], index: 2, kind: input, shape index: {}]   ;;  %s4743_s3 = inlined_call_operand.vmem [shape: bf16[8,4], index: 3, kind: input, shape index: {}]   ;;  %s4744_s4 = inlined_call_operand.vmem [shape: f32[16,32], index: 4, kind: input, shape index: {}]   ;;  %s4745_s5 = inlined_call_operand.vmem [shape: f32[8,1], index: 5, kind: input, shape index: {}]   ;;  %s4746_s6 = inlined_call_operand.hbm [shape: bf16[2,8,1024], index: 6, kind: output, shape index: {}]  }
   0x1   :  { %13 = vsyncpa [#allocation5 + $0x1], 0 }
   0x2   :  { %14 = vsyncpa [#allocation6], 0 }
   0x3   :  { %16 = vsyncpa [#allocation6 + $0x1], 0  ;;  %s4140_s21 = smov 0   ;;  %s4142_s22 = smov 0  }
   0x4   :  { %s4144_s23 = smov 0   ;;  %s4146_s24 = smov 0  }
   0x5   :  { %s4148_s25 = smov 0   ;;  %s4150_s26 = smov 0  }
   0x6   :  { %s4152_s27 = smov 0   ;;  %s4154_s28 = smov 0  }
   0x7 LB: > { %4751 = sst [smem:[#allocation10_spill]] %s4061_s21  ;;  %s3486_s29 = sadd.s32 4294967295, %s4089_s28   ;;  %s4089_s28 = sphi %s4154_s28, %s22_s28   ;;  %s4085_s27 = sphi %s4152_s27, %s4771_s27   ;;  %s4081_s26 = sphi %s4150_s26, %s4770_s26   ;;  %s4077_s25 = sphi %s4148_s25, %s4769_s25   ;;  %s4073_s24 = sphi %s4146_s24, %s4768_s24   ;;  %s4069_s23 = sphi %s4144_s23, %s4767_s23   ;;  %s4065_s22 = sphi %s4142_s22, %s4766_s22   ;;  %s4061_s21 = sphi %s4140_s21, %s4765_s21  }
   0x8   : > { %s3487_s30 = sadd.s32 4294967294, %s4089_s28   ;;  %s31_s7 = sadd.s32 1, %s4081_s26 }
   0x9   : > { %s34_s8 = sadd.s32 1, %s4085_s27  ;;  %p32_p0 = scmp.ge.s32.totalorder %s31_s7, 2 }
   0xa   : > { %s69_s9 = sadd.s32 1, %s4069_s23  ;;  %p76_p1 = scmp.ne.s32.totalorder %s4069_s23, %s4065_s22 }
   0xb   : > { %p77_p2 = scmp.eq.s32.totalorder %s4089_s28, 0  ;;  %s4773_s7 = smov (%p32_p0, %s31_s7), 0 }
   0xc   : > { %4752 = sst [smem:[#allocation11_spill]] %s4773_s7  ;;  %s4775_s8 = smov (!%p32_p0, %s34_s8), %s4085_s27 }
   0xd   : > { %s65_s10 = ssub.s32 %s4081_s26, %s4773_s7  ;;  %p4193_p3 = por %p77_p2, %p76_p1 }
   0xe   : > { %p36_p4 = scmp.ge.s32.totalorder %s4775_s8, 2  ;;  %p82_p5 = scmp.ne.s32.totalorder %s4065_s22, %s4061_s21 }
   0xf   : > { %p83_p6 = scmp.eq.s32.totalorder %s3486_s29, 0  ;;  %p192_p7 = scmp.eq.s32.totalorder %s3486_s29, 3 }
  0x10   : > { %s4777_s8 = smov (%p36_p4, %s4775_s8), 0  ;;  %p198_p10 = scmp.eq.s32.totalorder %s3487_s30, 3 }
  0x11   : > { %4754 = sst [smem:[#allocation12_spill]] %s4777_s8  ;;  %p4201_p8 = por %p83_p6, %p82_p5 }
  0x12   : > { %p4205_p9 = por %p192_p7, %p76_p1  ;;  %s64_s14 = ssub.s32 %s4085_s27, %s4777_s8 }
  0x13   : > { %s66_s15 = sor.u32 %s65_s10, %s64_s14  ;;  %p4211_p12 = por %p198_p10, %p82_p5 }
  0x14   : > { %p67_p11 = scmp.eq.s32.totalorder %s66_s15, 0  ;;  %p3885_p13 = scmp.lt.s32.totalorder %s4089_s28, 4 }
  0x15   : > { %s4757_s16 = scalar_select %p4211_p12, 1, 0 }
  0x16   : > { %s238_s17 = sand.u32 1, %s4069_s23   ;;  %s3491_s20 = sshll.u32 %s4081_s26, 2 }
  0x17   : > { %4758 = sst [smem:[#allocation13_spill]] %s4757_s16  ;;  %s3490_s19 = sshll.u32 %s238_s17, 3 }
  0x18   : > { %s4218_s18 = scalar_select %p67_p11, %s4069_s23, %s69_s9  }
  0x19   : > { %s3492_s29 = sshll.u32 %s4085_s27, 3  ;;  %s242_s7 = scalar_lea.vmem [#allocation4], %s3490_s19 }
  0x1a   : > { %s252_s21 = sshll.u32 %s242_s7, 4  ;;  %s248_s8 = sadd.s32 %s3492_s29, %s3491_s20  ;;  %s253_s21 = int_to_ptr.vmem [resolvable:$true] %s252_s21 }
  0x1b   : > { %s3493_s30 = sshll.u32 %s248_s8, 5  ;;  %p4224_p0 = pnand %p3885_p13, %p4193_p3 }
  0x1c   : > { %s250_s16 = scalar_lea.hbm %s4741_s1, %s3493_s30  ;;  %p3494_p1 = scmp.ge.s32.totalorder %s4089_s28, 1 }
  0x1d   : > { %p257_p2 = scmp.lt.s32.totalorder %s4089_s28, 5  ;;  %s239_s9 = scalar_lea.sflag [#allocation5], %s238_s17 }
  0x1e   : > { %p3967_p4 = pneg %p4224_p0  ;;  %s3978_s19 = scalar_lea.vmem %s253_s21, 128 }
  0x1f   : > { %p3979_p5 = scmp.ne.s32.totalorder %s253_s21, %s3978_s19  ;;  %s4091_s7 = smov [#allocation4]  }
  0x20   : > { %s3983_s8 = sshll.u32 %s4091_s7, 4  ;;  %s3984_s8 = int_to_ptr.vmem [resolvable:$false] %s3983_s8 }
  0x21   : > { %p3981_p6 = pnand %p3979_p5, %p3967_p4  ;;  %s3985_s11 = scalar_lea.vmem %s3984_s8, 256 }
  0x22   : > { %p3986_p3 = scmp.lt.s32.totalorder %s253_s21, %s3984_s8  ;;  %p3987_p10 = scmp.lt.s32.totalorder %s3985_s11, %s3978_s19 }
  0x23   : > { %p3982_p7 = pneg %p3981_p6 }
  0x24   : > { %p3988_p11 = por %p3987_p10, %p3986_p3 }
  0x26   : > { %p3989_p13 = pnand %p3988_p11, %p3982_p7 }
  0x28   : > { %3992 = shalt.err (!%p3989_p13)
}
  0x29   : > { %3880 = dma.hbm_to_vmem [thread:$0]  (!%p4224_p0), %s250_s16, 128, %s253_s21, %s239_s9  }
  0x2a   : > { %p258_p12 = pnand %p3494_p1, %p257_p2 }
  0x2b   : > { %s4242_s17 = sand.u32 (!%p258_p12), 1, %s4065_s22  }
  0x2c   : > { %261 = sbr.rel (%p258_p12) target bundleno = 1117 (0x45d), region = 44  ;;  %s3495_s20 = sshll.u32 (!%p258_p12), %s4242_s17, 3 }
  0x2d   : > { %s264_s29 = scalar_lea.sflag (!%p258_p12), [#allocation5], %s4242_s17  ;;  %s4246_s30 = scalar_lea.vmem (!%p258_p12), [#allocation4], %s3495_s20 }
  0x31   : > { %4052 = dma.done.wait (%p4201_p8), %s264_s29, 128  }
  0x32   : > { %4054 = vsyncadd (%p4201_p8), %s264_s29, 4294967168  ;;  %s3496_s21 = sshll.u32 %s4242_s17, 4  ;;  %p301_p12 = scmp.lt.s32.totalorder %s4077_s25, 1 }
  0x33   : > { %s4258_s19 = scalar_lea.vmem [#allocation7], %s3496_s21  ;;  %p3499_p0 = scmp.ne.s32.totalorder %s4073_s24, 0 }
  0x34   : > { %s302_s16 = scalar_select %p301_p12, %s4077_s25, 1 }
  0x35   : > { %312 = sbr.rel (%p3499_p0) target bundleno = 886 (0x376), region = 52  ;;  %s4095_s21 = smov (!%p3499_p0), 112  }
  0x36   : > { %s3549_s10 = sshll.u32 %s302_s16, 2  ;;  %s4096_s16 = smov (!%p3499_p0), 96  }
  0x37   : > { %s305_s9 = scalar_lea.vmem %s4740_s0, %s3549_s10  ;;  %s4097_s10 = smov (!%p3499_p0), 80  }
  0x38   : > { %s4098_s14 = smov (!%p3499_p0), 64   ;;  %s4099_s15 = smov (!%p3499_p0), 48  }
  0x39   : > { %s4101_s12 = smov (!%p3499_p0), 16  }
  0x3a   : > { %v3500_v0 = vld.sshfl [vmem:[%s305_s9] sm:$0x33 pattern:$0x76325410]  ;;  %vm328_vm0 = vcmask 1041408   ;;  %v4092_v3 = vmov 0  }
  0x3b   : > { %v323_v1 = vcombine.high %v3500_v0, %v3500_v0  ;;  %v330_v2 = vsel %vm328_vm0, %v3500_v0, 0  ;;  %367 = vmatprep.mubr.bf16.mxu0 %v4092_v3  ;;  %v4264_v4 = vld [vmem:[%s4744_s4 + $0x8] sm:$0xff]  ;;  %v4093_v5 = vmov 0.0   ;;  %v313_v6 = vld [vmem:[%s4742_s2] sm:$0xf]  ;;  %vm324_vm1 = vcmask 31744  }
  0x3c   : > { %3649 = vmatprep.subr.mxu1 %v4093_v5  ;;  %v4278_v7 = vld [vmem:[%s4744_s4] sm:$0xff]  ;;  %vm4094_vm2 = vmmov 0   ;;  %vm381_vm3 = vcmask 130048   ;;  %s4100_s9 = smov 32   ;;  %vm455_vm4 = vcmask 261120   ;;  %vm544_vm5 = vcmask 523520  }
  0x3d   : > { %3501 = vmatprep.subr.msk.bf16.mxu0 %vm328_vm0, %v323_v1  ;;  %3650 = vmatpush3.msra.mxu1 %v4264_v4  ;;  %vm633_vm6 = vcmask 785920   ;;  %vm724_vm7 = vcmask 1048320  }
  0x3e   : > { %350 = vmatpush1.bf16.msra.mxu0 %v330_v2  ;;  %3651 = vmatprep.subr.mxu1 %v4093_v5 }
  0x3f   : > { %3663 = vmatprep.subr.mxu0 %v4093_v5  ;;  %3652 = vmatpush3.msra.mxu1 %v4278_v7 }
  0x40   : > { %3653 = vmatprep.mubr.msk.f32.mxu1 %vm4094_vm2, %v4093_v5  ;;  %3656 = vmatprep.subr.mxu1 %v4093_v5 }
  0x41   : > { %3502 = vmatmul.mubr.msk.bf16.vlgmr.msra.gmra.mxu0 %vm324_vm1, %v313_v6 }
  0x42   : > { %3664 = vmatpush3.msra.mxu0 %v4264_v4  ;;  %3667 = vmatprep.mubr.msk.f32.mxu0 %vm4094_vm2, %v4093_v5 }
  0x43   : > { %3665 = vmatprep.subr.mxu0 %v4093_v5 }
  0x44   : > { %3666 = vmatpush3.msra.mxu0 %v4278_v7 }
  0x45   : > { %3677 = vmatprep.subr.mxu0 %v4093_v5 }
 0x101   : > { %v4288_v8 = vpop.f32.mrf.mxu0 }
 0x102   : > { %3654 = vmatmul.mubr.msk.f32.vlgmr.msra.gmra.mxu1 %vm381_vm3, %v4288_v8  ;;  %v814_v9 = vmul.f32 0.41935483, %v4288_v8  ;;  %v637_v10 = vmul.f32 0.4516129, %v4288_v8  ;;  %v904_v13 = vmul.f32 0.9032258, %v4288_v8 }
 0x103   : > { %v4294_v11 = vpop.f32.mrf.mxu0  ;;  %3657 = vmatpush3.msra.mxu1 %v4264_v4  ;;  %3660 = vmatprep.mubr.msk.f32.mxu1 %vm4094_vm2, %v4093_v5  ;;  %v728_v14 = vmul.f32 0.9354839, %v4288_v8  ;;  %v1084_v16 = vmul.f32 0.87096775, %v4288_v8  ;;  %v994_v17 = vmul.f32 0.38709676, %v4288_v8 }
 0x104   : > { %816 = vrot.lane.b32.xlu1 %v814_v9, %s4095_s21  ;;  %639 = vrot.lane.b32.xlu0 %v637_v10, %s4095_s21  ;;  %v1260_v18 = vmul.f32 0.83870965, %v4288_v8  ;;  %v1170_v19 = vmul.f32 0.3548387, %v4288_v8  ;;  %v1440_v20 = vmul.f32 0.8064516, %v4288_v8 }
 0x105   : > { %v373_v12 = vpop.f32.mrf.mxu0  ;;  %3658 = vmatprep.subr.mxu1 %v4093_v5  ;;  %v1350_v21 = vmul.f32 0.32258064, %v4288_v8  ;;  %v1616_v22 = vmul.f32 0.7741935, %v4288_v8  ;;  %v1526_v23 = vmul.f32 0.29032257, %v4288_v8 }
 0x106   : > { %3659 = vmatpush3.msra.mxu1 %v4278_v7  ;;  %v1798_v24 = vmul.f32 0.7419355, %v4294_v11  ;;  %v1707_v25 = vmul.f32 0.2580645, %v4294_v11  ;;  %v2151_v26 = vmul.f32 0.67741936, %v4294_v11 }
 0x107   : > { %v374_v15 = vpop.f32.mrf.mxu0  ;;  %3670 = vmatprep.subr.mxu1 %v4093_v5  ;;  %v2061_v27 = vmul.f32 0.19354838, %v4294_v11  ;;  %v2327_v28 = vmul.f32 0.6451613, %v4294_v11  ;;  %v2237_v29 = vmul.f32 0.16129032, %v4294_v11 }
 0x108   : > { %906 = vrot.lane.b32.xlu1 %v904_v13, %s4095_s21  ;;  %730 = vrot.lane.b32.xlu0 %v728_v14, %s4095_s21  ;;  %v2507_v30 = vmul.f32 0.61290324, %v4294_v11  ;;  %v2417_v31 = vmul.f32 0.12903225, %v4294_v11  ;;  %v2683_v32 = vmul.f32 0.58064514, %v4294_v11 }
 0x109   : > { %v2593_v33 = vmul.f32 0.09677419, %v4294_v11  ;;  %v2863_v34 = vmul.f32 0.5483871, %v4294_v11  ;;  %v2773_v35 = vmul.f32 0.06451613, %v4294_v11 }
 0x10a   : > { %v459_v36 = vmul.f32 0.48387095, %v4288_v8  ;;  %v2949_v37 = vmul.f32 0.032258064, %v4294_v11  ;;  %v548_v38 = vmul.f32 0.9677419, %v4288_v8 }
 0x10b   : > { %v3039_v39 = vmul.f32 0.516129, %v4294_v11  ;;  %v636_v40 = vmul.f32 0.5483871, %v4288_v8  ;;  %v813_v44 = vmul.f32 0.58064514, %v4288_v8 }
 0x10c   : > { %1086 = vrot.lane.b32.xlu1 %v1084_v16, %s4095_s21  ;;  %996 = vrot.lane.b32.xlu0 %v994_v17, %s4095_s21  ;;  %v727_v45 = vmul.f32 0.06451613, %v4288_v8  ;;  %v903_v50 = vmul.f32 0.09677419, %v4288_v8  ;;  %v993_v51 = vmul.f32 0.61290324, %v4288_v8 }
 0x10d   : > { %v1083_v56 = vmul.f32 0.12903225, %v4288_v8  ;;  %v1169_v57 = vmul.f32 0.6451613, %v4288_v8  ;;  %v1259_v62 = vmul.f32 0.16129032, %v4288_v8 }
 0x10e   : > { %v1349_v63 = vmul.f32 0.67741936, %v4288_v8  ;;  %v1439_v6 = vmul.f32 0.19354838, %v4288_v8  ;;  %v1525_v9 = vmul.f32 0.7096774, %v4288_v8 }
 0x10f   : > { %v1615_v15 = vmul.f32 0.22580644, %v4288_v8  ;;  %v1706_v16 = vmul.f32 0.7419355, %v4288_v8 }
 0x110   : > { %1262 = vrot.lane.b32.xlu1 %v1260_v18, %s4095_s21  ;;  %1172 = vrot.lane.b32.xlu0 %v1170_v19, %s4095_s21 }
 0x114   : > { %1442 = vrot.lane.b32.xlu1 %v1440_v20, %s4095_s21  ;;  %1352 = vrot.lane.b32.xlu0 %v1350_v21, %s4095_s21  ;;  %v1797_v21 = vmul.f32 0.2580645, %v4288_v8 }
 0x118   : > { %1618 = vrot.lane.b32.xlu1 %v1616_v22, %s4095_s21  ;;  %1528 = vrot.lane.b32.xlu0 %v1526_v23, %s4095_s21 }
 0x11c   : > { %1800 = vrot.lane.b32.xlu1 %v1798_v24, %s4095_s21  ;;  %1709 = vrot.lane.b32.xlu0 %v1707_v25, %s4095_s21  ;;  %v1885_v25 = vmul.f32 0.22580644, %v4294_v11 }
 0x120   : > { %2153 = vrot.lane.b32.xlu1 %v2151_v26, %s4095_s21  ;;  %2063 = vrot.lane.b32.xlu0 %v2061_v27, %s4095_s21  ;;  %v2060_v26 = vmul.f32 0.8064516, %v4294_v11 }
 0x124   : > { %2329 = vrot.lane.b32.xlu1 %v2327_v28, %s4095_s21  ;;  %2239 = vrot.lane.b32.xlu0 %v2237_v29, %s4095_s21 }
 0x128   : > { %2509 = vrot.lane.b32.xlu1 %v2507_v30, %s4095_s21  ;;  %2419 = vrot.lane.b32.xlu0 %v2417_v31, %s4095_s21  ;;  %v1973_v30 = vmul.f32 0.7096774, %v4294_v11  ;;  %v2150_v31 = vmul.f32 0.32258064, %v4294_v11 }
 0x12c   : > { %2685 = vrot.lane.b32.xlu1 %v2683_v32, %s4095_s21  ;;  %2595 = vrot.lane.b32.xlu0 %v2593_v33, %s4095_s21  ;;  %v2236_v32 = vmul.f32 0.83870965, %v4294_v11 }
 0x130   : > { %2865 = vrot.lane.b32.xlu1 %v2863_v34, %s4095_s21  ;;  %2775 = vrot.lane.b32.xlu0 %v2773_v35, %s4095_s21 }
 0x134   : > { %461 = vrot.lane.b32.xlu1 %v459_v36, %s4095_s21  ;;  %2951 = vrot.lane.b32.xlu0 %v2949_v37, %s4095_s21  ;;  %v2326_v37 = vmul.f32 0.3548387, %v4294_v11 }
 0x138   : > { %550 = vrot.lane.b32.xlu1 %v548_v38, %s4095_s21  ;;  %3041 = vrot.lane.b32.xlu0 %v3039_v39, %s4095_s21  ;;  %v2416_v38 = vmul.f32 0.87096775, %v4294_v11 }
 0x176   : > { %v817_v41 = vpop.permute.xlu1 %816  ;;  %v640_v42 = vpop.permute.xlu0 %639 }
 0x177   : > { %v642_v43 = vadd.f32 %v640_v42, %v636_v40  ;;  %v819_v48 = vadd.f32 %v817_v41, %v813_v44  ;;  %v2592_v44 = vmul.f32 0.9032258, %v4294_v11 }
 0x179   : > { %646 = vrot.lane.b32.xlu0 %v642_v43, %s4095_s21  ;;  %v2506_v43 = vmul.f32 0.38709676, %v4294_v11 }
 0x17a   : > { %v907_v46 = vpop.permute.xlu1 %906  ;;  %v731_v47 = vpop.permute.xlu0 %730 }
 0x17b   : > { %v733_v49 = vadd.f32 %v731_v47, %v727_v45  ;;  %v909_v54 = vadd.f32 %v907_v46, %v903_v50  ;;  %v458_v50 = vmul.f32 0.516129, %v4288_v8 }
 0x17d   : > { %737 = vrot.lane.b32.xlu1 %v733_v49, %s4095_s21  ;;  %823 = vrot.lane.b32.xlu0 %v819_v48, %s4096_s16  ;;  %v2682_v49 = vmul.f32 0.41935483, %v4294_v11 }
 0x17e   : > { %v1087_v52 = vpop.permute.xlu1 %1086  ;;  %v997_v53 = vpop.permute.xlu0 %996 }
 0x17f   : > { %v999_v55 = vadd.f32 %v997_v53, %v993_v51  ;;  %v1089_v60 = vadd.f32 %v1087_v52, %v1083_v56  ;;  %v2772_v51 = vmul.f32 0.9354839, %v4294_v11 }
 0x181   : > { %913 = vrot.lane.b32.xlu1 %v909_v54, %s4096_s16  ;;  %1003 = vrot.lane.b32.xlu0 %v999_v55, %s4097_s10 }
 0x182   : > { %v1263_v58 = vpop.permute.xlu1 %1262  ;;  %v1173_v59 = vpop.permute.xlu0 %1172 }
 0x183   : > { %v1175_v61 = vadd.f32 %v1173_v59, %v1169_v57  ;;  %v1265_v2 = vadd.f32 %v1263_v58, %v1259_v62  ;;  %v2862_v57 = vmul.f32 0.4516129, %v4294_v11  ;;  %v547_v58 = vmul.f32 0.032258064, %v4288_v8 }
 0x184   : > { %v2948_v59 = vmul.f32 0.9677419, %v4294_v11  ;;  %v3038_v8 = vmul.f32 0.48387095, %v4294_v11 }
 0x185   : > { %1093 = vrot.lane.b32.xlu1 %v1089_v60, %s4097_s10  ;;  %1179 = vrot.lane.b32.xlu0 %v1175_v61, %s4098_s14 }
 0x186   : > { %v1443_v0 = vpop.permute.xlu1 %1442  ;;  %v1353_v1 = vpop.permute.xlu0 %1352 }
 0x187   : > { %v1355_v3 = vadd.f32 %v1353_v1, %v1349_v63  ;;  %v1445_v13 = vadd.f32 %v1443_v0, %v1439_v6 }
 0x189   : > { %1269 = vrot.lane.b32.xlu1 %v1265_v2, %s4098_s14  ;;  %1359 = vrot.lane.b32.xlu0 %v1355_v3, %s4099_s15 }
 0x18a   : > { %v1619_v10 = vpop.permute.xlu1 %1618  ;;  %v1529_v12 = vpop.permute.xlu0 %1528 }
 0x18b   : > { %v1531_v14 = vadd.f32 %v1529_v12, %v1525_v9  ;;  %v1621_v19 = vadd.f32 %v1619_v10, %v1615_v15 }
 0x18d   : > { %1449 = vrot.lane.b32.xlu1 %v1445_v13, %s4099_s15  ;;  %1535 = vrot.lane.b32.xlu0 %v1531_v14, %s4100_s9 }
 0x18e   : > { %v1801_v17 = vpop.permute.xlu1 %1800  ;;  %v1710_v18 = vpop.permute.xlu0 %1709 }
 0x18f   : > { %v1712_v20 = vadd.f32 %v1710_v18, %v1706_v16  ;;  %v1803_v24 = vadd.f32 %v1801_v17, %v1797_v21 }
 0x191   : > { %1625 = vrot.lane.b32.xlu1 %v1621_v19, %s4100_s9  ;;  %1716 = vrot.lane.b32.xlu0 %v1712_v20, %s4101_s12 }
 0x192   : > { %v2154_v22 = vpop.permute.xlu1 %2153  ;;  %v2064_v23 = vpop.permute.xlu0 %2063 }
 0x193   : > { %v2066_v29 = vadd.f32 %v2064_v23, %v2060_v26  ;;  %v2156_v35 = vadd.f32 %v2154_v22, %v2150_v31  ;;  %v1884_v23 = vmul.f32 0.7741935, %v4294_v11 }
 0x195   : > { %1887 = vrot.lane.b32.xlu1 %v1885_v25, %s4095_s21  ;;  %1807 = vrot.lane.b32.xlu0 %v1803_v24, %s4101_s12 }
 0x196   : > { %v2330_v27 = vpop.permute.xlu1 %2329  ;;  %v2240_v28 = vpop.permute.xlu0 %2239 }
 0x197   : > { %v2242_v36 = vadd.f32 %v2240_v28, %v2236_v32  ;;  %v2332_v41 = vadd.f32 %v2330_v27, %v2326_v37  ;;  %v1972_v27 = vmul.f32 0.29032257, %v4294_v11 }
 0x199   : > { %1975 = vrot.lane.b32.xlu1 %v1973_v30, %s4095_s21  ;;  %2070 = vrot.lane.b32.xlu0 %v2066_v29, %s4095_s21 }
 0x19a   : > { %v2510_v33 = vpop.permute.xlu1 %2509  ;;  %v2420_v34 = vpop.permute.xlu0 %2419 }
 0x19b   : > { %v2422_v42 = vadd.f32 %v2420_v34, %v2416_v38  ;;  %v2512_v47 = vadd.f32 %v2510_v33, %v2506_v43 }
 0x19d   : > { %2160 = vrot.lane.b32.xlu1 %v2156_v35, %s4095_s21  ;;  %2246 = vrot.lane.b32.xlu0 %v2242_v36, %s4096_s16 }
 0x19e   : > { %v2686_v39 = vpop.permute.xlu1 %2685  ;;  %v2596_v40 = vpop.permute.xlu0 %2595 }
 0x19f   : > { %v2598_v48 = vadd.f32 %v2596_v40, %v2592_v44  ;;  %v2688_v54 = vadd.f32 %v2686_v39, %v2682_v49 }
 0x1a1   : > { %2336 = vrot.lane.b32.xlu1 %v2332_v41, %s4096_s16  ;;  %2426 = vrot.lane.b32.xlu0 %v2422_v42, %s4097_s10 }
 0x1a2   : > { %v2866_v45 = vpop.permute.xlu1 %2865  ;;  %v2776_v46 = vpop.permute.xlu0 %2775 }
 0x1a3   : > { %v2778_v56 = vadd.f32 %v2776_v46, %v2772_v51  ;;  %v2868_v61 = vadd.f32 %v2866_v45, %v2862_v57 }
 0x1a5   : > { %2516 = vrot.lane.b32.xlu1 %v2512_v47, %s4097_s10  ;;  %2602 = vrot.lane.b32.xlu0 %v2598_v48, %s4098_s14 }
 0x1a6   : > { %v462_v52 = vpop.permute.xlu1 %461  ;;  %v2952_v53 = vpop.permute.xlu0 %2951 }
 0x1a7   : > { %v464_v55 = vadd.f32 %v462_v52, %v458_v50  ;;  %v2954_v63 = vadd.f32 %v2952_v53, %v2948_v59 }
 0x1a9   : > { %2692 = vrot.lane.b32.xlu1 %v2688_v54, %s4098_s14  ;;  %3661 = vmatmul.mubr.msk.f32.vlgmr.msra.gmra.mxu1 %vm381_vm3, %v464_v55 }
 0x1aa   : > { %2782 = vrot.lane.b32.xlu0 %v2778_v56, %s4099_s15  ;;  %v551_v60 = vpop.permute.xlu1 %550  ;;  %3671 = vmatpush3.msra.mxu1 %v4264_v4  ;;  %v3042_v0 = vpop.permute.xlu0 %3041 }
 0x1ab   : > { %v553_v62 = vadd.f32 %v551_v60, %v547_v58  ;;  %3672 = vmatprep.subr.mxu1 %v4093_v5  ;;  %3674 = vmatprep.mubr.msk.f32.mxu1 %vm4094_vm2, %v4093_v5  ;;  %v3044_v1 = vadd.f32 %v3042_v0, %v3038_v8 }
 0x1ac   : > { %3673 = vmatpush3.msra.mxu1 %v4278_v7 }
 0x1ad   : > { %2872 = vrot.lane.b32.xlu1 %v2868_v61, %s4099_s15  ;;  %3668 = vmatmul.mubr.msk.f32.vlgmr.msra.gmra.mxu0 %vm381_vm3, %v553_v62 }
 0x1ae   : > { %2958 = vrot.lane.b32.xlu0 %v2954_v63, %s4100_s9  ;;  %3684 = vmatprep.subr.mxu1 %v4093_v5 }
 0x1af   : > { %3678 = vmatpush3.msra.mxu0 %v4264_v4  ;;  %3681 = vmatprep.mubr.msk.f32.mxu0 %vm4094_vm2, %v4093_v5 }
 0x1b0   : > { %3679 = vmatprep.subr.mxu0 %v4093_v5 }
 0x1b1   : > { %3048 = vrot.lane.b32.xlu1 %v3044_v1, %s4100_s9  ;;  %3680 = vmatpush3.msra.mxu0 %v4278_v7 }
 0x1b2   : > { %3131 = vrot.lane.b32.xlu0 %v4294_v11, %s4101_s12  ;;  %3691 = vmatprep.subr.mxu0 %v4093_v5 }
 0x1c2   : > { %v451_v2 = vpop.f32.mrf.mxu1 }
 0x1c3   : > { %456 = vst.msk [vmem:[#allocation3] sm:$0xff] %vm455_vm4, %v451_v2 }
 0x1c4   : > { %v3655_v3 = vpop.f32.mrf.mxu1 }
 0x1eb   : > { %v647_v6 = vpop.permute.xlu0 %646 }
 0x1ec   : > { %3675 = vmatmul.mubr.msk.f32.vlgmr.msra.gmra.mxu1 %vm381_vm3, %v647_v6 }
 0x1ed   : > { %3685 = vmatpush3.msra.mxu1 %v4264_v4  ;;  %3688 = vmatprep.mubr.msk.f32.mxu1 %vm4094_vm2, %v4093_v5 }
 0x1ee   : > { %3686 = vmatprep.subr.mxu1 %v4093_v5 }
 0x1ef   : > { %v738_v9 = vpop.permute.xlu1 %737  ;;  %3687 = vmatpush3.msra.mxu1 %v4278_v7  ;;  %v824_v10 = vpop.permute.xlu0 %823 }
 0x1f0   : > { %3682 = vmatmul.mubr.msk.f32.vlgmr.msra.gmra.mxu0 %vm381_vm3, %v738_v9  ;;  %3689 = vmatmul.mubr.msk.f32.vlgmr.msra.gmra.mxu1 %vm381_vm3, %v824_v10 }
 0x1f1   : > { %3698 = vmatprep.subr.mxu1 %v4093_v5  ;;  %3692 = vmatpush3.msra.mxu0 %v4264_v4 }
 0x1f2   : > { %3699 = vmatpush3.msra.mxu1 %v4264_v4  ;;  %3693 = vmatprep.subr.mxu0 %v4093_v5 }
 0x1f3   : > { %3700 = vmatprep.subr.mxu1 %v4093_v5  ;;  %3694 = vmatpush3.msra.mxu0 %v4278_v7  ;;  %v914_v12 = vpop.permute.xlu1 %913  ;;  %v1004_v13 = vpop.permute.xlu0 %1003 }
 0x1f4   : > { %3695 = vmatprep.mubr.msk.f32.mxu0 %vm4094_vm2, %v4093_v5  ;;  %3701 = vmatpush3.msra.mxu1 %v4278_v7 }
 0x1f5   : > { %3702 = vmatprep.mubr.msk.f32.mxu1 %vm4094_vm2, %v4093_v5  ;;  %3696 = vmatmul.mubr.msk.f32.vlgmr.msra.gmra.mxu0 %vm381_vm3, %v914_v12 }
 0x1f6   : > { %3703 = vmatmul.mubr.msk.f32.vlgmr.msra.gmra.mxu1 %vm381_vm3, %v1004_v13  ;;  %3705 = vmatprep.subr.mxu0 %v4093_v5 }
 0x1f7   : > { %3712 = vmatprep.subr.mxu1 %v4093_v5  ;;  %3706 = vmatpush3.msra.mxu0 %v4264_v4  ;;  %v1094_v14 = vpop.permute.xlu1 %1093  ;;  %v1180_v15 = vpop.permute.xlu0 %1179 }
 0x1f8   : > { %3713 = vmatpush3.msra.mxu1 %v4264_v4  ;;  %3707 = vmatprep.subr.mxu0 %v4093_v5 }
 0x1f9   : > { %3714 = vmatprep.subr.mxu1 %v4093_v5  ;;  %3708 = vmatpush3.msra.mxu0 %v4278_v7 }
 0x1fa   : > { %3709 = vmatprep.mubr.msk.f32.mxu0 %vm4094_vm2, %v4093_v5  ;;  %3715 = vmatpush3.msra.mxu1 %v4278_v7 }
 0x1fb   : > { %3716 = vmatprep.mubr.msk.f32.mxu1 %vm4094_vm2, %v4093_v5  ;;  %3710 = vmatmul.mubr.msk.f32.vlgmr.msra.gmra.mxu0 %vm381_vm3, %v1094_v14  ;;  %v1270_v16 = vpop.permute.xlu1 %1269  ;;  %v1360_v17 = vpop.permute.xlu0 %1359 }
 0x1fc   : > { %3717 = vmatmul.mubr.msk.f32.vlgmr.msra.gmra.mxu1 %vm381_vm3, %v1180_v15  ;;  %3719 = vmatprep.subr.mxu0 %v4093_v5 }
 0x1fd   : > { %3726 = vmatprep.subr.mxu1 %v4093_v5  ;;  %3720 = vmatpush3.msra.mxu0 %v4264_v4 }
 0x1fe   : > { %3727 = vmatpush3.msra.mxu1 %v4264_v4  ;;  %3721 = vmatprep.subr.mxu0 %v4093_v5 }
 0x1ff   : > { %3728 = vmatprep.subr.mxu1 %v4093_v5  ;;  %3722 = vmatpush3.msra.mxu0 %v4278_v7  ;;  %v1450_v18 = vpop.permute.xlu1 %1449  ;;  %v1536_v19 = vpop.permute.xlu0 %1535 }
 0x200   : > { %3723 = vmatprep.mubr.msk.f32.mxu0 %vm4094_vm2, %v4093_v5  ;;  %3729 = vmatpush3.msra.mxu1 %v4278_v7 }
 0x201   : > { %3730 = vmatprep.mubr.msk.f32.mxu1 %vm4094_vm2, %v4093_v5  ;;  %3724 = vmatmul.mubr.msk.f32.vlgmr.msra.gmra.mxu0 %vm381_vm3, %v1270_v16 }
 0x202   : > { %3731 = vmatmul.mubr.msk.f32.vlgmr.msra.gmra.mxu1 %vm381_vm3, %v1360_v17  ;;  %3733 = vmatprep.subr.mxu0 %v4093_v5 }
 0x203   : > { %3740 = vmatprep.subr.mxu1 %v4093_v5  ;;  %3734 = vmatpush3.msra.mxu0 %v4264_v4  ;;  %v1626_v20 = vpop.permute.xlu1 %1625  ;;  %v1717_v21 = vpop.permute.xlu0 %1716 }
 0x204   : > { %3741 = vmatpush3.msra.mxu1 %v4264_v4  ;;  %3735 = vmatprep.subr.mxu0 %v4093_v5 }
 0x205   : > { %3742 = vmatprep.subr.mxu1 %v4093_v5  ;;  %3736 = vmatpush3.msra.mxu0 %v4278_v7 }
 0x206   : > { %3737 = vmatprep.mubr.msk.f32.mxu0 %vm4094_vm2, %v4093_v5  ;;  %3743 = vmatpush3.msra.mxu1 %v4278_v7 }
 0x207   : > { %3744 = vmatprep.mubr.msk.f32.mxu1 %vm4094_vm2, %v4093_v5  ;;  %3738 = vmatmul.mubr.msk.f32.vlgmr.msra.gmra.mxu0 %vm381_vm3, %v1450_v18  ;;  %v1888_v22 = vpop.permute.xlu1 %1887  ;;  %v1808_v24 = vpop.permute.xlu0 %1807 }
 0x208   : > { %3745 = vmatmul.mubr.msk.f32.vlgmr.msra.gmra.mxu1 %vm381_vm3, %v1536_v19  ;;  %3747 = vmatprep.subr.mxu0 %v4093_v5  ;;  %v1890_v25 = vadd.f32 %v1888_v22, %v1884_v23 }
 0x209   : > { %3754 = vmatprep.subr.mxu1 %v4093_v5  ;;  %3748 = vmatpush3.msra.mxu0 %v4264_v4 }
 0x20a   : > { %3755 = vmatpush3.msra.mxu1 %v4264_v4  ;;  %3749 = vmatprep.subr.mxu0 %v4093_v5 }
 0x20b   : > { %3756 = vmatprep.subr.mxu1 %v4093_v5  ;;  %3750 = vmatpush3.msra.mxu0 %v4278_v7  ;;  %v1976_v26 = vpop.permute.xlu1 %1975  ;;  %v2071_v29 = vpop.permute.xlu0 %2070 }
 0x20c   : > { %3751 = vmatprep.mubr.msk.f32.mxu0 %vm4094_vm2, %v4093_v5  ;;  %3757 = vmatpush3.msra.mxu1 %v4278_v7  ;;  %v1978_v28 = vadd.f32 %v1976_v26, %v1972_v27 }
 0x20d   : > { %3758 = vmatprep.mubr.msk.f32.mxu1 %vm4094_vm2, %v4093_v5  ;;  %3752 = vmatmul.mubr.msk.f32.vlgmr.msra.gmra.mxu0 %vm381_vm3, %v1626_v20 }
 0x20e   : > { %3759 = vmatmul.mubr.msk.f32.vlgmr.msra.gmra.mxu1 %vm381_vm3, %v1717_v21  ;;  %3761 = vmatprep.subr.mxu0 %v4093_v5 }
 0x20f   : > { %3762 = vmatpush3.msra.mxu0 %v4264_v4  ;;  %3768 = vmatprep.subr.mxu1 %v4093_v5  ;;  %v2161_v11 = vpop.permute.xlu1 %2160  ;;  %v2247_v30 = vpop.permute.xlu0 %2246 }
 0x210   : > { %3763 = vmatprep.subr.mxu0 %v4093_v5  ;;  %3769 = vmatpush3.msra.mxu1 %v4264_v4 }
 0x211   : > { %3764 = vmatpush3.msra.mxu0 %v4278_v7  ;;  %3765 = vmatprep.mubr.msk.f32.mxu0 %vm4094_vm2, %v4093_v5 }
 0x212   : > { %3770 = vmatprep.subr.mxu1 %v4093_v5  ;;  %3766 = vmatmul.mubr.msk.f32.vlgmr.msra.gmra.mxu0 %vm381_vm3, %v1808_v24 }
 0x213   : > { %3771 = vmatpush3.msra.mxu1 %v4278_v7  ;;  %3772 = vmatprep.mubr.msk.f32.mxu1 %vm4094_vm2, %v4093_v5  ;;  %v2337_v31 = vpop.permute.xlu1 %2336  ;;  %v2427_v32 = vpop.permute.xlu0 %2426 }
 0x214   : > { %3775 = vmatprep.subr.mxu0 %v4093_v5  ;;  %3782 = vmatprep.subr.mxu1 %v4093_v5 }
 0x215   : > { %3773 = vmatmul.mubr.msk.f32.vlgmr.msra.gmra.mxu1 %vm381_vm3, %v1890_v25  ;;  %3776 = vmatpush3.msra.mxu0 %v4264_v4 }
 0x216   : > { %3783 = vmatpush3.msra.mxu1 %v4264_v4  ;;  %3777 = vmatprep.subr.mxu0 %v4093_v5 }
 0x217   : > { %3784 = vmatprep.subr.mxu1 %v4093_v5  ;;  %3778 = vmatpush3.msra.mxu0 %v4278_v7  ;;  %v2517_v33 = vpop.permute.xlu1 %2516  ;;  %v2603_v34 = vpop.permute.xlu0 %2602 }
 0x218   : > { %3785 = vmatpush3.msra.mxu1 %v4278_v7  ;;  %3779 = vmatprep.mubr.msk.f32.mxu0 %vm4094_vm2, %v4093_v5 }
 0x219   : > { %3786 = vmatprep.mubr.msk.f32.mxu1 %vm4094_vm2, %v4093_v5  ;;  %3789 = vmatprep.subr.mxu0 %v4093_v5 }
 0x21a   : > { %3796 = vmatprep.subr.mxu1 %v4093_v5  ;;  %3780 = vmatmul.mubr.msk.f32.vlgmr.msra.gmra.mxu0 %vm381_vm3, %v1978_v28 }
 0x21b   : > { %3787 = vmatmul.mubr.msk.f32.vlgmr.msra.gmra.mxu1 %vm381_vm3, %v2071_v29  ;;  %3790 = vmatpush3.msra.mxu0 %v4264_v4  ;;  %v2693_v35 = vpop.permute.xlu1 %2692 }
 0x21c   : > { %3797 = vmatpush3.msra.mxu1 %v4264_v4  ;;  %3791 = vmatprep.subr.mxu0 %v4093_v5  ;;  %v2783_v36 = vpop.permute.xlu0 %2782 }
 0x21d   : > { %3798 = vmatprep.subr.mxu1 %v4093_v5  ;;  %3792 = vmatpush3.msra.mxu0 %v4278_v7 }
 0x21e   : > { %3799 = vmatpush3.msra.mxu1 %v4278_v7  ;;  %3793 = vmatprep.mubr.msk.f32.mxu0 %vm4094_vm2, %v4093_v5 }
 0x21f   : > { %3800 = vmatprep.mubr.msk.f32.mxu1 %vm4094_vm2, %v4093_v5  ;;  %3803 = vmatprep.subr.mxu0 %v4093_v5  ;;  %v2873_v37 = vpop.permute.xlu1 %2872 }
 0x220   : > { %3810 = vmatprep.subr.mxu1 %v4093_v5  ;;  %3794 = vmatmul.mubr.msk.f32.vlgmr.msra.gmra.mxu0 %vm381_vm3, %v2161_v11  ;;  %v2959_v38 = vpop.permute.xlu0 %2958 }
 0x221   : > { %3801 = vmatmul.mubr.msk.f32.vlgmr.msra.gmra.mxu1 %vm381_vm3, %v2247_v30  ;;  %3804 = vmatpush3.msra.mxu0 %v4264_v4 }
 0x222   : > { %3811 = vmatpush3.msra.mxu1 %v4264_v4  ;;  %3805 = vmatprep.subr.mxu0 %v4093_v5 }
 0x223   : > { %3812 = vmatprep.subr.mxu1 %v4093_v5  ;;  %3806 = vmatpush3.msra.mxu0 %v4278_v7  ;;  %v3049_v39 = vpop.permute.xlu1 %3048 }
 0x224   : > { %3813 = vmatpush3.msra.mxu1 %v4278_v7  ;;  %3807 = vmatprep.mubr.msk.f32.mxu0 %vm4094_vm2, %v4093_v5  ;;  %v3132_v40 = vpop.permute.xlu0 %3131 }
 0x225   : > { %3814 = vmatprep.mubr.msk.f32.mxu1 %vm4094_vm2, %v4093_v5  ;;  %3817 = vmatprep.subr.mxu0 %v4093_v5 }
 0x226   : > { %3824 = vmatprep.subr.mxu1 %v4093_v5  ;;  %3808 = vmatmul.mubr.msk.f32.vlgmr.msra.gmra.mxu0 %vm381_vm3, %v2337_v31 }
 0x227   : > { %3815 = vmatmul.mubr.msk.f32.vlgmr.msra.gmra.mxu1 %vm381_vm3, %v2427_v32  ;;  %3818 = vmatpush3.msra.mxu0 %v4264_v4 }
 0x228   : > { %3825 = vmatpush3.msra.mxu1 %v4264_v4  ;;  %3819 = vmatprep.subr.mxu0 %v4093_v5 }
 0x229   : > { %3826 = vmatprep.subr.mxu1 %v4093_v5  ;;  %3820 = vmatpush3.msra.mxu0 %v4278_v7 }
 0x22a   : > { %3827 = vmatpush3.msra.mxu1 %v4278_v7  ;;  %3821 = vmatprep.mubr.msk.f32.mxu0 %vm4094_vm2, %v4093_v5 }
 0x22b   : > { %3828 = vmatprep.mubr.msk.f32.mxu1 %vm4094_vm2, %v4093_v5  ;;  %3831 = vmatprep.subr.mxu0 %v4093_v5 }
 0x22c   : > { %3838 = vmatprep.subr.mxu1 %v4093_v5  ;;  %3822 = vmatmul.mubr.msk.f32.vlgmr.msra.gmra.mxu0 %vm381_vm3, %v2517_v33 }
 0x22d   : > { %3829 = vmatmul.mubr.msk.f32.vlgmr.msra.gmra.mxu1 %vm381_vm3, %v2603_v34  ;;  %3832 = vmatpush3.msra.mxu0 %v4264_v4 }
 0x22e   : > { %3839 = vmatpush3.msra.mxu1 %v4264_v4  ;;  %3833 = vmatprep.subr.mxu0 %v4093_v5 }
 0x22f   : > { %3840 = vmatprep.subr.mxu1 %v4093_v5  ;;  %3834 = vmatpush3.msra.mxu0 %v4278_v7 }
 0x230   : > { %3841 = vmatpush3.msra.mxu1 %v4278_v7  ;;  %3835 = vmatprep.mubr.msk.f32.mxu0 %vm4094_vm2, %v4093_v5 }
 0x231   : > { %3842 = vmatprep.mubr.msk.f32.mxu1 %vm4094_vm2, %v4093_v5  ;;  %3845 = vmatprep.subr.mxu0 %v4093_v5 }
 0x232   : > { %3852 = vmatprep.subr.mxu1 %v4093_v5  ;;  %3836 = vmatmul.mubr.msk.f32.vlgmr.msra.gmra.mxu0 %vm381_vm3, %v2693_v35 }
 0x233   : > { %3843 = vmatmul.mubr.msk.f32.vlgmr.msra.gmra.mxu1 %vm381_vm3, %v2783_v36  ;;  %3846 = vmatpush3.msra.mxu0 %v4264_v4 }
 0x234   : > { %3853 = vmatpush3.msra.mxu1 %v4264_v4  ;;  %3847 = vmatprep.subr.mxu0 %v4093_v5 }
 0x235   : > { %3854 = vmatprep.subr.mxu1 %v4093_v5  ;;  %3848 = vmatpush3.msra.mxu0 %v4278_v7 }
 0x236   : > { %3855 = vmatpush3.msra.mxu1 %v4278_v7  ;;  %3849 = vmatprep.mubr.msk.f32.mxu0 %vm4094_vm2, %v4093_v5 }
 0x237   : > { %3856 = vmatprep.mubr.msk.f32.mxu1 %vm4094_vm2, %v4093_v5  ;;  %3859 = vmatprep.subr.mxu0 %v4093_v5 }
 0x238   : > { %3850 = vmatmul.mubr.msk.f32.vlgmr.msra.gmra.mxu0 %vm381_vm3, %v2873_v37  ;;  %3857 = vmatmul.mubr.msk.f32.vlgmr.msra.gmra.mxu1 %vm381_vm3, %v2959_v38 }
 0x239   : > { %3860 = vmatpush3.msra.mxu0 %v4264_v4  ;;  %3866 = vmatprep.subr.mxu1 %v4093_v5 }
 0x23a   : > { %3861 = vmatprep.subr.mxu0 %v4093_v5  ;;  %3867 = vmatpush3.msra.mxu1 %v4264_v4 }
 0x23b   : > { %3862 = vmatpush3.msra.mxu0 %v4278_v7  ;;  %3868 = vmatprep.subr.mxu1 %v4093_v5 }
 0x23c   : > { %3863 = vmatprep.mubr.msk.f32.mxu0 %vm4094_vm2, %v4093_v5  ;;  %3869 = vmatpush3.msra.mxu1 %v4278_v7 }
 0x23d   : > { %3870 = vmatprep.mubr.msk.f32.mxu1 %vm4094_vm2, %v4093_v5  ;;  %3864 = vmatmul.mubr.msk.f32.vlgmr.msra.gmra.mxu0 %vm381_vm3, %v3049_v39 }
 0x23e   : > { %3871 = vmatmul.mubr.msk.f32.vlgmr.msra.gmra.mxu1 %vm381_vm3, %v3132_v40 }
 0x269   : > { %v536_v41 = vpop.f32.mrf.mxu1 }
 0x26a   : > { %541 = vrot.lane.b32.xlu1 %v536_v41, %s4100_s9 }
 0x26b   : > { %v3662_v4 = vpop.f32.mrf.mxu1 }
 0x26d   : > { %v625_v42 = vpop.f32.mrf.mxu0 }
 0x26e   : > { %630 = vrot.lane.b32.xlu1 %v625_v42, %s4098_s14 }
 0x26f   : > { %v3669_v43 = vpop.f32.mrf.mxu0 }
 0x2ac   : > { %v716_v44 = vpop.f32.mrf.mxu1 }
 0x2ad   : > { %721 = vrot.lane.b32.xlu1 %v716_v44, %s4096_s16 }
 0x2ae   : > { %v3676_v7 = vpop.f32.mrf.mxu1 }
 0x2b0   : > { %v807_v45 = vpop.f32.mrf.mxu0  ;;  %v893_v46 = vpop.f32.mrf.mxu1 }
 0x2b1   : > { %811 = vst.msk [vmem:[#allocation3 + $0x8] sm:$0xff] %vm455_vm4, %v807_v45  ;;  %898 = vrot.lane.b32.xlu0 %v893_v46, %s4100_s9 }
 0x2b2   : > { %v3683_v5 = vpop.f32.mrf.mxu0  ;;  %v3690_v47 = vpop.f32.mrf.mxu1 }
 0x2b5   : > { %v983_v48 = vpop.f32.mrf.mxu0 }
 0x2b6   : > { %v1073_v49 = vpop.f32.mrf.mxu1  ;;  %988 = vrot.lane.b32.xlu0 %v983_v48, %s4098_s14 }
 0x2b7   : > { %v3697_v50 = vpop.f32.mrf.mxu0 }
 0x2b8   : > { %v3704_v51 = vpop.f32.mrf.mxu1 }
 0x2ba   : > { %1078 = vrot.lane.b32.xlu0 %v1073_v49, %s4096_s16 }
 0x2bb   : > { %v1163_v52 = vpop.f32.mrf.mxu0 }
 0x2bc   : > { %1167 = vst.msk [vmem:[#allocation3 + $0x10] sm:$0xff] %vm455_vm4, %v1163_v52  ;;  %v1249_v53 = vpop.f32.mrf.mxu1 }
 0x2bd   : > { %1254 = vrot.lane.b32.xlu1 %v1249_v53, %s4100_s9  ;;  %v3711_v54 = vpop.f32.mrf.mxu0 }
 0x2be   : > { %v3718_v55 = vpop.f32.mrf.mxu1 }
 0x2c1   : > { %v1339_v56 = vpop.f32.mrf.mxu0 }
 0x2c2   : > { %v1429_v57 = vpop.f32.mrf.mxu1  ;;  %1344 = vrot.lane.b32.xlu1 %v1339_v56, %s4098_s14 }
 0x2c3   : > { %v3725_v58 = vpop.f32.mrf.mxu0 }
 0x2c4   : > { %v3732_v59 = vpop.f32.mrf.mxu1 }
 0x2c6   : > { %1434 = vrot.lane.b32.xlu1 %v1429_v57, %s4096_s16 }
 0x2c7   : > { %v1519_v60 = vpop.f32.mrf.mxu0 }
 0x2c8   : > { %1523 = vst.msk [vmem:[#allocation3 + $0x18] sm:$0xff] %vm455_vm4, %v1519_v60  ;;  %v1605_v61 = vpop.f32.mrf.mxu1 }
 0x2c9   : > { %1610 = vrot.lane.b32.xlu0 %v1605_v61, %s4100_s9  ;;  %v3739_v62 = vpop.f32.mrf.mxu0 }
 0x2ca   : > { %v3746_v63 = vpop.f32.mrf.mxu1 }
 0x2cd   : > { %v1695_v0 = vpop.f32.mrf.mxu0 }
 0x2ce   : > { %v1786_v8 = vpop.f32.mrf.mxu1  ;;  %1700 = vrot.lane.b32.xlu0 %v1695_v0, %s4098_s14 }
 0x2cf   : > { %v3753_v1 = vpop.f32.mrf.mxu0 }
 0x2d0   : > { %v3760_v2 = vpop.f32.mrf.mxu1 }
 0x2d2   : > { %v1877_v3 = vpop.f32.mrf.mxu0  ;;  %1791 = vrot.lane.b32.xlu0 %v1786_v8, %s4096_s16 }
 0x2d3   : > { %1882 = vst.msk [vmem:[#allocation3 + $0x20] sm:$0xff] %vm455_vm4, %v1877_v3 }
 0x2d4   : > { %v3767_v6 = vpop.f32.mrf.mxu0 }
 0x2d5   : > { %v1962_v9 = vpop.f32.mrf.mxu1 }
 0x2d6   : > { %1967 = vrot.lane.b32.xlu1 %v1962_v9, %s4100_s9 }
 0x2d7   : > { %v3774_v10 = vpop.f32.mrf.mxu1 }
 0x2da   : > { %v2050_v12 = vpop.f32.mrf.mxu0 }
 0x2db   : > { %v2140_v13 = vpop.f32.mrf.mxu1  ;;  %2055 = vrot.lane.b32.xlu1 %v2050_v12, %s4098_s14 }
 0x2dc   : > { %v3781_v14 = vpop.f32.mrf.mxu0  ;;  %v542_v15 = vpop.permute.xlu1 %541 }
 0x2dd   : > { %v3788_v16 = vpop.f32.mrf.mxu1  ;;  %545 = vst.msk [vmem:[#allocation3] sm:$0xff] %vm544_vm5, %v542_v15 }
 0x2df   : > { %2145 = vrot.lane.b32.xlu1 %v2140_v13, %s4096_s16 }
 0x2e0   : > { %v2230_v17 = vpop.f32.mrf.mxu0  ;;  %v631_v18 = vpop.permute.xlu1 %630 }
 0x2e1   : > { %2234 = vst.msk [vmem:[#allocation3 + $0x28] sm:$0xff] %vm455_vm4, %v2230_v17  ;;  %v2316_v19 = vpop.f32.mrf.mxu1 }
 0x2e2   : > { %634 = vst.msk [vmem:[#allocation3] sm:$0xff] %vm633_vm6, %v631_v18  ;;  %2321 = vrot.lane.b32.xlu0 %v2316_v19, %s4100_s9  ;;  %v3795_v20 = vpop.f32.mrf.mxu0 }
 0x2e3   : > { %v3802_v21 = vpop.f32.mrf.mxu1 }
 0x2e6   : > { %v2406_v22 = vpop.f32.mrf.mxu0 }
 0x2e7   : > { %v2496_v23 = vpop.f32.mrf.mxu1  ;;  %2411 = vrot.lane.b32.xlu0 %v2406_v22, %s4098_s14 }
 0x2e8   : > { %v3809_v24 = vpop.f32.mrf.mxu0 }
 0x2e9   : > { %v3816_v25 = vpop.f32.mrf.mxu1 }
 0x2eb   : > { %2501 = vrot.lane.b32.xlu0 %v2496_v23, %s4096_s16 }
 0x2ec   : > { %v2586_v26 = vpop.f32.mrf.mxu0 }
 0x2ed   : > { %2590 = vst.msk [vmem:[#allocation3 + $0x30] sm:$0xff] %vm455_vm4, %v2586_v26  ;;  %v2672_v27 = vpop.f32.mrf.mxu1 }
 0x2ee   : > { %2677 = vrot.lane.b32.xlu1 %v2672_v27, %s4100_s9  ;;  %v3823_v28 = vpop.f32.mrf.mxu0 }
 0x2ef   : > { %v3830_v29 = vpop.f32.mrf.mxu1 }
 0x2f2   : > { %v2762_v11 = vpop.f32.mrf.mxu0 }
 0x2f3   : > { %v2852_v30 = vpop.f32.mrf.mxu1  ;;  %2767 = vrot.lane.b32.xlu1 %v2762_v11, %s4098_s14 }
 0x2f4   : > { %v3837_v31 = vpop.f32.mrf.mxu0 }
 0x2f5   : > { %v3844_v32 = vpop.f32.mrf.mxu1 }
 0x2f7   : > { %2857 = vrot.lane.b32.xlu1 %v2852_v30, %s4096_s16 }
 0x2f8   : > { %v2942_v33 = vpop.f32.mrf.mxu0  ;;  %v3028_v34 = vpop.f32.mrf.mxu1 }
 0x2f9   : > { %2946 = vst.msk [vmem:[#allocation3 + $0x38] sm:$0xff] %vm455_vm4, %v2942_v33  ;;  %3033 = vrot.lane.b32.xlu0 %v3028_v34, %s4100_s9 }
 0x2fa   : > { %v3851_v35 = vpop.f32.mrf.mxu0  ;;  %v3858_v36 = vpop.f32.mrf.mxu1 }
 0x2fd   : > { %v3118_v37 = vpop.f32.mrf.mxu0 }
 0x2fe   : > { %v3201_v38 = vpop.f32.mrf.mxu1  ;;  %3123 = vrot.lane.b32.xlu0 %v3118_v37, %s4098_s14 }
 0x2ff   : > { %v3865_v39 = vpop.f32.mrf.mxu0 }
 0x300   : > { %v3872_v40 = vpop.f32.mrf.mxu1 }
 0x302   : > { %3206 = vrot.lane.b32.xlu0 %v3201_v38, %s4096_s16 }
 0x31f   : > { %v722_v41 = vpop.permute.xlu1 %721 }
 0x320   : > { %725 = vst.msk [vmem:[#allocation3] sm:$0xff] %vm724_vm7, %v722_v41 }
 0x323   : > { %v899_v4 = vpop.permute.xlu0 %898 }
 0x324   : > { %901 = vst.msk [vmem:[#allocation3 + $0x8] sm:$0xff] %vm544_vm5, %v899_v4 }
 0x328   : > { %v989_v42 = vpop.permute.xlu0 %988 }
 0x329   : > { %991 = vst.msk [vmem:[#allocation3 + $0x8] sm:$0xff] %vm633_vm6, %v989_v42 }
 0x32c   : > { %v1079_v43 = vpop.permute.xlu0 %1078 }
 0x32d   : > { %1081 = vst.msk [vmem:[#allocation3 + $0x8] sm:$0xff] %vm724_vm7, %v1079_v43 }
 0x32f   : > { %v1255_v44 = vpop.permute.xlu1 %1254 }
 0x330   : > { %1257 = vst.msk [vmem:[#allocation3 + $0x10] sm:$0xff] %vm544_vm5, %v1255_v44 }
 0x334   : > { %v1345_v7 = vpop.permute.xlu1 %1344 }
 0x335   : > { %1347 = vst.msk [vmem:[#allocation3 + $0x10] sm:$0xff] %vm633_vm6, %v1345_v7 }
 0x338   : > { %v1435_v45 = vpop.permute.xlu1 %1434 }
 0x339   : > { %1437 = vst.msk [vmem:[#allocation3 + $0x10] sm:$0xff] %vm724_vm7, %v1435_v45 }
 0x33b   : > { %v1611_v46 = vpop.permute.xlu0 %1610 }
 0x33c   : > { %1613 = vst.msk [vmem:[#allocation3 + $0x18] sm:$0xff] %vm544_vm5, %v1611_v46 }
 0x340   : > { %v1701_v5 = vpop.permute.xlu0 %1700 }
 0x341   : > { %1703 = vst.msk [vmem:[#allocation3 + $0x18] sm:$0xff] %vm633_vm6, %v1701_v5 }
 0x344   : > { %v1792_v47 = vpop.permute.xlu0 %1791 }
 0x345   : > { %1794 = vst.msk [vmem:[#allocation3 + $0x18] sm:$0xff] %vm724_vm7, %v1792_v47 }
 0x348   : > { %v1968_v48 = vpop.permute.xlu1 %1967 }
 0x349   : > { %1970 = vst.msk [vmem:[#allocation3 + $0x20] sm:$0xff] %vm544_vm5, %v1968_v48 }
 0x34d   : > { %v2056_v49 = vpop.permute.xlu1 %2055 }
 0x34e   : > { %2058 = vst.msk [vmem:[#allocation3 + $0x20] sm:$0xff] %vm633_vm6, %v2056_v49 }
 0x351   : > { %v2146_v50 = vpop.permute.xlu1 %2145 }
 0x352   : > { %2148 = vst.msk [vmem:[#allocation3 + $0x20] sm:$0xff] %vm724_vm7, %v2146_v50 }
 0x354   : > { %v2322_v51 = vpop.permute.xlu0 %2321 }
 0x355   : > { %2324 = vst.msk [vmem:[#allocation3 + $0x28] sm:$0xff] %vm544_vm5, %v2322_v51 }
 0x359   : > { %v2412_v52 = vpop.permute.xlu0 %2411 }
 0x35a   : > { %2414 = vst.msk [vmem:[#allocation3 + $0x28] sm:$0xff] %vm633_vm6, %v2412_v52 }
 0x35d   : > { %v2502_v53 = vpop.permute.xlu0 %2501 }
 0x35e   : > { %2504 = vst.msk [vmem:[#allocation3 + $0x28] sm:$0xff] %vm724_vm7, %v2502_v53 }
 0x360   : > { %v2678_v54 = vpop.permute.xlu1 %2677 }
 0x361   : > { %2680 = vst.msk [vmem:[#allocation3 + $0x30] sm:$0xff] %vm544_vm5, %v2678_v54 }
 0x365   : > { %v2768_v55 = vpop.permute.xlu1 %2767 }
 0x366   : > { %2770 = vst.msk [vmem:[#allocation3 + $0x30] sm:$0xff] %vm633_vm6, %v2768_v55 }
 0x369   : > { %v2858_v56 = vpop.permute.xlu1 %2857 }
 0x36a   : > { %2860 = vst.msk [vmem:[#allocation3 + $0x30] sm:$0xff] %vm724_vm7, %v2858_v56 }
 0x36b   : > { %v3034_v57 = vpop.permute.xlu0 %3033 }
 0x36c   : > { %3036 = vst.msk [vmem:[#allocation3 + $0x38] sm:$0xff] %vm544_vm5, %v3034_v57 }
 0x370   : > { %v3124_v58 = vpop.permute.xlu0 %3123 }
 0x371   : > { %3126 = vst.msk [vmem:[#allocation3 + $0x38] sm:$0xff] %vm633_vm6, %v3124_v58 }
 0x374   : > { %v3207_v59 = vpop.permute.xlu0 %3206 }
 0x375   : > { %3209 = vst.msk [vmem:[#allocation3 + $0x38] sm:$0xff] %vm724_vm7, %v3207_v59 }
 0x376 PF: > { %v3211_v60 = vld [vmem:[%s4246_s30] sm:$0xff]  ;;  %v3224_v61 = vlaneseq  ;;  %v4102_v63 = vmov 1983009808   ;;  %v4103_v8 = vmov 0   ;;  %vm3241_vm8 = vcmask 1041408   ;;  %s3550_s20 = sshll.u32 %s4073_s24, 5 }
 0x377   : > { %v3336_v62 = vld [vmem:[%s4745_s5] sm:$0xff]  ;;  %v3222_v0 = vunpack.c.l.s4 %v4102_v63  ;;  %3286 = vmatprep.mubr.bf16.mxu0 %v4103_v8  ;;  %3327 = vmatprep.mubr.bf16.mxu1 %v4103_v8  ;;  %v3220_v3 = vcombine.high %v3211_v60, %v3211_v60  ;;  %vm3237_vm9 = vcmask 31744   ;;  %s3214_s29 = scalar_lea.vmem [#allocation3], %s3550_s20  ;;  %s3544_s21 = sshll.u32 %s4073_s24, 2 }
 0x378   : > { %v3225_v1 = vshrl.u32 %v3224_v61, 7  ;;  %3963 = vset.pattern.permute.xlu0 %v4103_v8  ;;  %v3210_v16 = vld [vmem:[%s4743_s3] sm:$0xf]  ;;  %s3545_s16 = sshll.u32 %s4077_s25, 3  ;;  %s3385_s25 = sshll.u32 %s4258_s19, 4  ;;  %s3386_s25 = int_to_ptr.vmem [resolvable:$true] %s3385_s25 }
 0x379   : > { %v3223_v2 = vunpack.c.0.s8 %v3222_v0  ;;  %3339 = vperm.xlu0 %3963, %v3336_v62   ;;  %s3381_s10 = sadd.s32 %s3545_s16, %s3544_s21  ;;  %s3369_s12 = scalar_lea.sflag [#allocation6], %s4242_s17 }
 0x37a   : > { %s3546_s24 = sshll.u32 %s3381_s10, 6  ;;  %s3993_s7 = scalar_lea.vmem %s3386_s25, 256 }
 0x37b   : > { %v3226_v6 = vsub.s32 %v3223_v2, %v3225_v1  ;;  %s4691_s9 = scalar_lea.hbm %s4746_s6, %s3546_s24  ;;  %p3994_p8 = scmp.ne.s32.totalorder %s3386_s25, %s3993_s7 }
 0x37c   : > { %v3215_v17 = vld [vmem:[%s3214_s29] sm:$0xff]  ;;  %v3217_v18 = vld [vmem:[%s3214_s29 + $0x10] sm:$0xff]  ;;  %v3216_v22 = vld [vmem:[%s3214_s29 + $0x8] sm:$0xff]  ;;  %s4104_s8 = smov [#allocation7]  }
 0x37d   : > { %v3227_v9 = vrot.slane %v3211_v60, %v3226_v6  ;;  %v3234_v10 = vrot.slane %v3220_v3, %v3226_v6  ;;  %v3218_v23 = vld [vmem:[%s3214_s29 + $0x18] sm:$0xff]  ;;  %p3995_p1 = pnand %p3994_p8, %p4205_p9  ;;  %s3997_s30 = sshll.u32 %s4104_s8, 4  ;;  %s3998_s30 = int_to_ptr.vmem [resolvable:$false] %s3997_s30 }
 0x37e   : > { %s3999_s11 = scalar_lea.vmem %s3998_s30, 512  ;;  %p4000_p4 = scmp.lt.s32.totalorder %s3386_s25, %s3998_s30 }
 0x37f   : > { %v3235_v12 = vcombine.high %v3227_v9, %v3227_v9  ;;  %v3236_v13 = vcombine.high %v3234_v10, %v3234_v10  ;;  %v3243_v14 = vsel %vm3241_vm8, %v3227_v9, 0  ;;  %v3249_v15 = vsel %vm3241_vm8, %v3234_v10, 0  ;;  %p3996_p2 = pneg %p3995_p1  ;;  %p4001_p5 = scmp.lt.s32.totalorder %s3999_s11, %s3993_s7 }
 0x381   : > { %3537 = vmatprep.subr.msk.bf16.mxu0 %vm3241_vm8, %v3235_v12  ;;  %3539 = vmatprep.subr.msk.bf16.mxu1 %vm3241_vm8, %v3236_v13  ;;  %p4002_p6 = por %p4001_p5, %p4000_p4 }
 0x382   : > { %3269 = vmatpush1.bf16.msra.mxu0 %v3243_v14  ;;  %3310 = vmatpush1.bf16.msra.mxu1 %v3249_v15 }
 0x383   : > { %p4003_p7 = pnand %p4002_p6, %p3996_p2 }
 0x385   : > { %3538 = vmatmul.mubr.msk.bf16.vlgmr.msra.gmra.mxu0 %vm3237_vm9, %v3210_v16  ;;  %3540 = vmatmul.mubr.msk.bf16.vlgmr.msra.gmra.mxu1 %vm3237_vm9, %v3210_v16 }
 0x3f4   : > { %v3340_v19 = vpop.permute.xlu0 %3339 }
 0x445   : > { %v3288_v20 = vpop.f32.mrf.mxu0  ;;  %v3329_v21 = vpop.f32.mrf.mxu1 }
 0x446   : > { %v3289_v24 = vadd.f32 %v3288_v20, %v3215_v17  ;;  %v3330_v25 = vadd.f32 %v3329_v21, %v3217_v18 }
 0x447   : > { %v3290_v26 = vpop.f32.mrf.mxu0  ;;  %v3331_v27 = vpop.f32.mrf.mxu1 }
 0x448   : > { %v3342_v28 = vadd.f32 %v3340_v19, %v3289_v24  ;;  %v3344_v29 = vadd.f32 %v3340_v19, %v3330_v25  ;;  %v3291_v11 = vadd.f32 %v3290_v26, %v3216_v22  ;;  %v3332_v30 = vadd.f32 %v3331_v27, %v3218_v23 }
 0x449   : > { %v3292_v31 = vpop.f32.mrf.mxu0  ;;  %v3333_v32 = vpop.f32.mrf.mxu1 }
 0x44a   : > { %v3343_v33 = vadd.f32 %v3340_v19, %v3291_v11  ;;  %v3345_v34 = vadd.f32 %v3340_v19, %v3332_v30  ;;  %v3346_v37 = vmax.f32 %v3342_v28, 0.0  ;;  %v3348_v38 = vmax.f32 %v3344_v29, 0.0 }
 0x44b   : > { %v3293_v35 = vpop.f32.mrf.mxu0  ;;  %v3334_v36 = vpop.f32.mrf.mxu1 }
 0x44c   : > { %v3347_v39 = vmax.f32 %v3343_v33, 0.0  ;;  %v3349_v40 = vmax.f32 %v3345_v34, 0.0 }
 0x44e   : > { %v3551_v41 = vpack.c.bf16 %v3347_v39, %v3346_v37  ;;  %v3552_v4 = vpack.c.bf16 %v3349_v40, %v3348_v38 }
 0x450   : > { %3366 = vst [vmem:[%s4258_s19] sm:$0xff] %v3551_v41  ;;  %3367 = vst [vmem:[%s4258_s19 + $0x8] sm:$0xff] %v3552_v4 }
 0x451   : > { %4006 = shalt.err (!%p4003_p7)
}
 0x452   : > { %s4007_s19 = scalar_lea.hbm %s4691_s9, 256  ;;  %s4011_s29 = scalar_lea.hbm %s4746_s6, 1024 }
 0x453   : > { %p4008_p3 = scmp.ne.s32.totalorder %s4691_s9, %s4007_s19  ;;  %p4012_p13 = scmp.lt.s32.totalorder %s4691_s9, %s4746_s6 }
 0x454   : > { %p4013_p12 = scmp.lt.s32.totalorder %s4011_s29, %s4007_s19 }
 0x455   : > { %p4009_p10 = pnand %p4008_p3, %p4205_p9 }
 0x456   : > { %p4014_p0 = por %p4013_p12, %p4012_p13 }
 0x457   : > { %p4010_p11 = pneg %p4009_p10 }
 0x459   : > { %p4015_p8 = pnand %p4014_p0, %p4010_p11 }
 0x45b   : > { %4018 = shalt.err (!%p4015_p8)
}
 0x45c   : > { %3875 = dma.vmem_to_hbm [thread:$0]  (%p4205_p9), %s3386_s25, 256, %s4691_s9, %s3369_s12  }
 0x45d PF: > { %s4760_s10 = sld [smem:[#allocation10_spill]]  ;;  %p3886_p1 = scmp.ge.s32.totalorder %s4089_s28, 2 }
 0x45e   : > { %s4761_s24 = sld [smem:[#allocation13_spill]] }
 0x463   : > { %s3397_s14 = sand.u32 1, %s4760_s10  }
 0x464   : > { %p4762_p2 = scmp.ne.s32.totalorder %s4761_s24, 0  ;;  %s3398_s15 = scalar_lea.sflag [#allocation6], %s3397_s14 }
 0x466   : > { %p3882_p4 = pnand %p3886_p1, %p4762_p2 }
 0x468   : > { %p3883_p5 = pneg %p3882_p4 }
 0x46a   : > { %4056 = dma.done.wait (%p3883_p5), %s3398_s15, 256  }
 0x46b   : > { %4058 = vsyncadd (%p3883_p5), %s3398_s15, 4294967040  ;;  %s22_s28 = sadd.s32 1, %s4089_s28   ;;  %s4763_s13 = sld [smem:[#allocation11_spill]] }
 0x46c   : > { %p19_p6 = scmp.ge.s32.totalorder %s22_s28, 6   ;;  %s4764_s9 = sld [smem:[#allocation12_spill]] }
 0x46d   : > { %s4765_s21 = smov %s4065_s22  ;;  %s4766_s22 = smov %s4069_s23 }
 0x46e   : > { %s4767_s23 = smov %s4218_s18  ;;  %s4768_s24 = smov %s4081_s26 }
 0x46f   : > { %s4769_s25 = smov %s4085_s27  ;;  %21 = sbr.rel (!%p19_p6) target bundleno = 7 (0x7), region = 98 }
 0x471   : > { %s4770_s26 = smov %s4763_s13 }
 0x472   : > { %s4771_s27 = smov %s4764_s9 }
 0x474   :  { %3403 = vsyncpa [#allocation5], 1 }
 0x475   :  { %3405 = vsyncpa [#allocation5 + $0x1], 1 }
 0x476   :  { %3406 = vsyncpa [#allocation6], 1 }
 0x477   :  { %3408 = vsyncpa [#allocation6 + $0x1], 1 }

</bundles_post_ra>
